<compile_context>
chip_gen: v6e
topology: v6e:2x2x1
jax: 0.10.0
libtpu: 0.0.40
codegen_flags: <defaults>
</compile_context>

<pallas_src>
import jax
import jax.numpy as jnp
from jax.experimental import pallas as pl
from jax.experimental.pallas import tpu as pltpu


# ----------------------------- Pallas kernel -------------------------------

def _parallel_three_split_kernel(
    x_ref,        # (B, linear1N)               f32
    w1_ref,       # (linear1N, linear2N)        bf16
    wAcat_ref,    # (linear2N, 3*linear3N)      bf16  -- [wa1 | wb1 | wc1]
    wB_ref,       # (3, linear3N, linear3N)     bf16  -- [wa2, wb2, wc2]
    w3_ref,       # (3, linear3N, linear5N)     bf16  -- fc3 split by rows
    w4_ref,       # (linear5N, linear5N)        bf16
    bias_ref,     # (8, 3*linear3N)             f32   -- packed biases
    out_ref,      # (B, linear5N)               f32
):
    f32 = jnp.float32
    bf16 = jnp.bfloat16

    n2 = w1_ref.shape[1]
    n3 = wB_ref.shape[1]
    n5 = w4_ref.shape[1]
    B = x_ref.shape[0]

    # Packed-bias rows (static sublane/lane slices; widths are 128-multiples).
    b1 = bias_ref[0:1, :n2]         # fc1 bias
    bA = bias_ref[1:2, :3 * n3]     # [ba1 | bb1 | bc1]
    b3 = bias_ref[5:6, :n5]         # fc3 bias
    b4 = bias_ref[6:7, :n5]         # fc4 bias

    # fc1 (bias in f32, activation re-quantized to bf16 once).
    x = x_ref[...].astype(bf16)
    h = (jnp.dot(x, w1_ref[...], preferred_element_type=f32) + b1).astype(bf16)

    # Three branch first-layers fused along N into one matmul.
    x1 = jnp.dot(h, wAcat_ref[...], preferred_element_type=f32) + bA

    # Per-branch second layer + split-fc3 accumulation (replaces torch.cat).
    acc = jnp.zeros((B, n5), f32)
    for i in range(3):                               # static unroll
        x1_i = x1[:, i * n3:(i + 1) * n3].astype(bf16)
        bB_i = bias_ref[2 + i:3 + i, :n3]
        x2_i = jnp.dot(x1_i, wB_ref[i], preferred_element_type=f32) + bB_i
        acc = acc + jnp.dot(
            x2_i.astype(bf16), w3_ref[i], preferred_element_type=f32
        )

    # fc3 bias + fc4.
    y = acc + b3
    out = jnp.dot(y.astype(bf16), w4_ref[...], preferred_element_type=f32) + b4
    out_ref[...] = out.astype(out_ref.dtype)


# ------------------------------- Wrapper ------------------------------------

def parallel_three_layer_split(x, params):
    """Fused forward pass.

    x:      any shape whose trailing dims flatten to linear1N features
            (mirrors torch .squeeze(); explicit reshape avoids the batch==1
            pitfall of jnp.squeeze).
    params: dict produced by init_params (bf16 weights, packed f32 biases,
            branch-first weights concatenated along N, branch-second and fc3
            weights stacked on a leading axis of 3).
    """
    linear1N = params["w1"].shape[0]
    linear5N = params["w4"].shape[1]

    x2d = jnp.asarray(x, jnp.float32).reshape(-1, linear1N)
    B = x2d.shape[0]

    args = (
        x2d,
        params["w1"], params["wAcat"], params["wB"],
        params["w3s"], params["w4"], params["bias"],
    )

    # Whole-array, single-buffered VMEM residency (no grid, no pipelining).
    vmem_spec = pl.BlockSpec(memory_space=pltpu.MemorySpace.VMEM)

    # Scoped-VMEM limit: enough for all operands + headroom, capped at 48 MiB
    # (raises v5e's 16 MiB default when factor >= 1, safe on v7x's 64 MiB).
    total_bytes = sum(int(a.size) * a.dtype.itemsize for a in args)
    total_bytes += B * linear5N * 4
    vmem_limit = min(48 * 1024 * 1024, max(32 * 1024 * 1024, 2 * total_bytes))

    out = pl.pallas_call(
        _parallel_three_split_kernel,
        out_shape=jax.ShapeDtypeStruct((B, linear5N), jnp.float32),
        in_specs=[vmem_spec] * len(args),
        out_specs=vmem_spec,
        compiler_params=pltpu.CompilerParams(vmem_limit_bytes=vmem_limit),
    )(*args)
    return out


# ------------------------- Deterministic param init -------------------------

def init_params(factor, key):
    n1 = int(512 * factor)
    n2 = int(2048 * factor)
    n3 = int(1024 * factor)
    n4 = 3 * n3
    n5 = int(512 * factor)

    dims = {
        "1":  (n1, n2),
        "a1": (n2, n3), "a2": (n3, n3),
        "b1": (n2, n3), "b2": (n3, n3),
        "c1": (n2, n3), "c2": (n3, n3),
        "3":  (n4, n5),
        "4":  (n5, n5),
    }

    raw = {}
    keys = jax.random.split(key, 2 * len(dims))
    for i, (name, (din, dout)) in enumerate(dims.items()):
        kw, kb = keys[2 * i], keys[2 * i + 1]
        scale = 1.0 / jnp.sqrt(jnp.float32(din))
        # stored as (in, out) — transposed relative to torch's (out, in)
        raw["w" + name] = (
            jax.random.uniform(kw, (din, dout), jnp.float32, -1.0, 1.0) * scale
        )
        raw["b" + name] = (
            jax.random.uniform(kb, (1, dout), jnp.float32, -1.0, 1.0) * scale
        )

    bf16 = jnp.bfloat16
    W = n4  # packed-bias lane width (3*linear3N >= linear2N always)

    def pad_row(b):
        return jnp.pad(b, ((0, 0), (0, W - b.shape[1])))

    # One packed bias array -> one DMA.  Row layout:
    #   0: b1   1: [ba1|bb1|bc1]   2-4: ba2,bb2,bc2   5: b3   6: b4   7: pad
    bias = jnp.concatenate(
        [
            pad_row(raw["b1"]),
            jnp.concatenate([raw["ba1"], raw["bb1"], raw["bc1"]], axis=1),
            pad_row(raw["ba2"]), pad_row(raw["bb2"]), pad_row(raw["bc2"]),
            pad_row(raw["b3"]), pad_row(raw["b4"]),
            jnp.zeros((1, W), jnp.float32),
        ],
        axis=0,
    )  # (8, 3*n3) f32

    params = {
        "w1": raw["w1"].astype(bf16),
        # branch order (a, b, c) must match the torch concat order
        "wAcat": jnp.concatenate(
            [raw["wa1"], raw["wb1"], raw["wc1"]], axis=1
        ).astype(bf16),
        "wB": jnp.stack([raw["wa2"], raw["wb2"], raw["wc2"]]).astype(bf16),
        # fc3 split into per-branch row blocks (replaces the concat)
        "w3s": jnp.stack(
            [raw["w3"][i * n3:(i + 1) * n3] for i in range(3)]
        ).astype(bf16),
        "w4": raw["w4"].astype(bf16),
        "bias": bias,
    }
    return params, (n1, n5)


# Pure-JAX reference using identical bf16-weight / f32-accumulate math.
def reference_forward(x, p):
    f32, bf16 = jnp.float32, jnp.bfloat16
    n1, n2 = p["w1"].shape
    n3 = p["wB"].shape[1]
    n5 = p["w4"].shape[1]
    bias = p["bias"]

    x = jnp.asarray(x, f32).reshape(-1, n1)

    def lin(h, w, b):
        return jnp.dot(h.astype(bf16), w, preferred_element_type=f32) + b

    h = lin(x, p["w1"], bias[0:1, :n2])
    x1 = lin(h, p["wAcat"], bias[1:2, :3 * n3])
    acc = jnp.zeros((x.shape[0], n5), f32)
    for i in range(3):
        x2 = lin(x1[:, i * n3:(i + 1) * n3], p["wB"][i], bias[2 + i:3 + i, :n3])
        acc = acc + jnp.dot(
            x2.astype(bf16), p["w3s"][i], preferred_element_type=f32
        )
    y = acc + bias[5:6, :n5]
    return lin(y, p["w4"], bias[6:7, :n5])


# --------------------------------- Main --------------------------------------

if __name__ == "__main__":
    factor = 0.25   # linear1N=128, linear2N=512, linear3N=256, linear5N=128
    batch = 8

    key = jax.random.PRNGKey(0)
    k_params, k_x = jax.random.split(key)
    params, (linear1N, linear5N) = init_params(factor, k_params)

    # Mirrors the torch usage: input with trailing singleton dims that
    # .squeeze() collapses to (batch, linear1N).
    x = jax.random.normal(k_x, (batch, 1, linear1N, 1), jnp.float32)

    y = parallel_three_layer_split(x, params)
    y = jax.block_until_ready(y)
    assert y.shape == (batch, linear5N), y.shape

    y_ref = reference_forward(x, params)
    max_err = float(jnp.max(jnp.abs(y - y_ref)))
    assert jnp.allclose(y, y_ref, rtol=2e-2, atol=2e-2), max_err

    print("KERNEL_OK")
</pallas_src>

<mosaic_0001>
module attributes {stable_mosaic.version = 11 : i64} {
  func.func @_parallel_three_split_kernel(%arg0: memref<8x128xf32, #tpu.memory_space<vmem>>, %arg1: memref<128x512xbf16, #tpu.memory_space<vmem>>, %arg2: memref<512x768xbf16, #tpu.memory_space<vmem>>, %arg3: memref<3x256x256xbf16, #tpu.memory_space<vmem>>, %arg4: memref<3x256x128xbf16, #tpu.memory_space<vmem>>, %arg5: memref<128x128xbf16, #tpu.memory_space<vmem>>, %arg6: memref<8x768xf32, #tpu.memory_space<vmem>>, %arg7: memref<8x128xf32, #tpu.memory_space<vmem>>) attributes {dimension_semantics = [], scalar_prefetch = 0 : i64, scratch_operands = 0 : i64, tpu.core_type = #tpu.core_type<tc>} {
    %c0 = arith.constant 0 : index
    %c0_0 = arith.constant 0 : index
    %0 = vector.load %arg6[%c0, %c0_0] : memref<8x768xf32, #tpu.memory_space<vmem>>, vector<1x512xf32>
    %c1 = arith.constant 1 : index
    %c0_1 = arith.constant 0 : index
    %1 = vector.load %arg6[%c1, %c0_1] : memref<8x768xf32, #tpu.memory_space<vmem>>, vector<1x768xf32>
    %c5 = arith.constant 5 : index
    %c0_2 = arith.constant 0 : index
    %2 = vector.load %arg6[%c5, %c0_2] : memref<8x768xf32, #tpu.memory_space<vmem>>, vector<1x128xf32>
    %c6 = arith.constant 6 : index
    %c0_3 = arith.constant 0 : index
    %3 = vector.load %arg6[%c6, %c0_3] : memref<8x768xf32, #tpu.memory_space<vmem>>, vector<1x128xf32>
    %c0_4 = arith.constant 0 : index
    %c0_5 = arith.constant 0 : index
    %4 = vector.load %arg0[%c0_4, %c0_5] : memref<8x128xf32, #tpu.memory_space<vmem>>, vector<8x128xf32>
    %5 = arith.truncf %4 : vector<8x128xf32> to vector<8x128xbf16>
    %c0_6 = arith.constant 0 : index
    %c0_7 = arith.constant 0 : index
    %6 = vector.load %arg1[%c0_6, %c0_7] : memref<128x512xbf16, #tpu.memory_space<vmem>>, vector<128x512xbf16>
    %cst = arith.constant dense<0.000000e+00> : vector<8x512xf32>
    %7 = tpu.matmul %5, %6, %cst {dimension_numbers = #tpu.dot_dimension_numbers<[1], [0], [0], [1], [0, 0, 1, 1], [], []>} : vector<8x128xbf16>, vector<128x512xbf16>, vector<8x512xf32> -> vector<8x512xf32>
    %8 = vector.broadcast %0 : vector<1x512xf32> to vector<8x512xf32>
    %9 = arith.addf %7, %8 : vector<8x512xf32>
    %10 = arith.truncf %9 : vector<8x512xf32> to vector<8x512xbf16>
    %c0_8 = arith.constant 0 : index
    %c0_9 = arith.constant 0 : index
    %11 = vector.load %arg2[%c0_8, %c0_9] : memref<512x768xbf16, #tpu.memory_space<vmem>>, vector<512x768xbf16>
    %cst_10 = arith.constant dense<0.000000e+00> : vector<8x768xf32>
    %12 = tpu.matmul %10, %11, %cst_10 {dimension_numbers = #tpu.dot_dimension_numbers<[1], [0], [0], [1], [0, 0, 1, 1], [], []>} : vector<8x512xbf16>, vector<512x768xbf16>, vector<8x768xf32> -> vector<8x768xf32>
    %13 = vector.broadcast %1 : vector<1x768xf32> to vector<8x768xf32>
    %14 = arith.addf %12, %13 : vector<8x768xf32>
    %cst_11 = arith.constant 0.000000e+00 : f32
    %15 = vector.broadcast %cst_11 : f32 to vector<8x128xf32>
    %16 = vector.extract_strided_slice %14 {offsets = [0, 0], sizes = [8, 256], strides = [1, 1]} : vector<8x768xf32> to vector<8x256xf32>
    %17 = arith.truncf %16 : vector<8x256xf32> to vector<8x256xbf16>
    %c2 = arith.constant 2 : index
    %c0_12 = arith.constant 0 : index
    %18 = vector.load %arg6[%c2, %c0_12] : memref<8x768xf32, #tpu.memory_space<vmem>>, vector<1x256xf32>
    %c0_13 = arith.constant 0 : index
    %c0_14 = arith.constant 0 : index
    %c0_15 = arith.constant 0 : index
    %19 = vector.load %arg3[%c0_13, %c0_14, %c0_15] : memref<3x256x256xbf16, #tpu.memory_space<vmem>>, vector<1x256x256xbf16>
    %20 = vector.shape_cast %19 : vector<1x256x256xbf16> to vector<256x256xbf16>
    %cst_16 = arith.constant dense<0.000000e+00> : vector<8x256xf32>
    %21 = tpu.matmul %17, %20, %cst_16 {dimension_numbers = #tpu.dot_dimension_numbers<[1], [0], [0], [1], [0, 0, 1, 1], [], []>} : vector<8x256xbf16>, vector<256x256xbf16>, vector<8x256xf32> -> vector<8x256xf32>
    %22 = vector.broadcast %18 : vector<1x256xf32> to vector<8x256xf32>
    %23 = arith.addf %21, %22 : vector<8x256xf32>
    %24 = arith.truncf %23 : vector<8x256xf32> to vector<8x256xbf16>
    %c0_17 = arith.constant 0 : index
    %c0_18 = arith.constant 0 : index
    %c0_19 = arith.constant 0 : index
    %25 = vector.load %arg4[%c0_17, %c0_18, %c0_19] : memref<3x256x128xbf16, #tpu.memory_space<vmem>>, vector<1x256x128xbf16>
    %26 = vector.shape_cast %25 : vector<1x256x128xbf16> to vector<256x128xbf16>
    %cst_20 = arith.constant dense<0.000000e+00> : vector<8x128xf32>
    %27 = tpu.matmul %24, %26, %cst_20 {dimension_numbers = #tpu.dot_dimension_numbers<[1], [0], [0], [1], [0, 0, 1, 1], [], []>} : vector<8x256xbf16>, vector<256x128xbf16>, vector<8x128xf32> -> vector<8x128xf32>
    %28 = arith.addf %15, %27 : vector<8x128xf32>
    %29 = vector.extract_strided_slice %14 {offsets = [0, 256], sizes = [8, 256], strides = [1, 1]} : vector<8x768xf32> to vector<8x256xf32>
    %30 = arith.truncf %29 : vector<8x256xf32> to vector<8x256xbf16>
    %c3 = arith.constant 3 : index
    %c0_21 = arith.constant 0 : index
    %31 = vector.load %arg6[%c3, %c0_21] : memref<8x768xf32, #tpu.memory_space<vmem>>, vector<1x256xf32>
    %c1_22 = arith.constant 1 : index
    %c0_23 = arith.constant 0 : index
    %c0_24 = arith.constant 0 : index
    %32 = vector.load %arg3[%c1_22, %c0_23, %c0_24] : memref<3x256x256xbf16, #tpu.memory_space<vmem>>, vector<1x256x256xbf16>
    %33 = vector.shape_cast %32 : vector<1x256x256xbf16> to vector<256x256xbf16>
    %cst_25 = arith.constant dense<0.000000e+00> : vector<8x256xf32>
    %34 = tpu.matmul %30, %33, %cst_25 {dimension_numbers = #tpu.dot_dimension_numbers<[1], [0], [0], [1], [0, 0, 1, 1], [], []>} : vector<8x256xbf16>, vector<256x256xbf16>, vector<8x256xf32> -> vector<8x256xf32>
    %35 = vector.broadcast %31 : vector<1x256xf32> to vector<8x256xf32>
    %36 = arith.addf %34, %35 : vector<8x256xf32>
    %37 = arith.truncf %36 : vector<8x256xf32> to vector<8x256xbf16>
    %c1_26 = arith.constant 1 : index
    %c0_27 = arith.constant 0 : index
    %c0_28 = arith.constant 0 : index
    %38 = vector.load %arg4[%c1_26, %c0_27, %c0_28] : memref<3x256x128xbf16, #tpu.memory_space<vmem>>, vector<1x256x128xbf16>
    %39 = vector.shape_cast %38 : vector<1x256x128xbf16> to vector<256x128xbf16>
    %cst_29 = arith.constant dense<0.000000e+00> : vector<8x128xf32>
    %40 = tpu.matmul %37, %39, %cst_29 {dimension_numbers = #tpu.dot_dimension_numbers<[1], [0], [0], [1], [0, 0, 1, 1], [], []>} : vector<8x256xbf16>, vector<256x128xbf16>, vector<8x128xf32> -> vector<8x128xf32>
    %41 = arith.addf %28, %40 : vector<8x128xf32>
    %42 = vector.extract_strided_slice %14 {offsets = [0, 512], sizes = [8, 256], strides = [1, 1]} : vector<8x768xf32> to vector<8x256xf32>
    %43 = arith.truncf %42 : vector<8x256xf32> to vector<8x256xbf16>
    %c4 = arith.constant 4 : index
    %c0_30 = arith.constant 0 : index
    %44 = vector.load %arg6[%c4, %c0_30] : memref<8x768xf32, #tpu.memory_space<vmem>>, vector<1x256xf32>
    %c2_31 = arith.constant 2 : index
    %c0_32 = arith.constant 0 : index
    %c0_33 = arith.constant 0 : index
    %45 = vector.load %arg3[%c2_31, %c0_32, %c0_33] : memref<3x256x256xbf16, #tpu.memory_space<vmem>>, vector<1x256x256xbf16>
    %46 = vector.shape_cast %45 : vector<1x256x256xbf16> to vector<256x256xbf16>
    %cst_34 = arith.constant dense<0.000000e+00> : vector<8x256xf32>
    %47 = tpu.matmul %43, %46, %cst_34 {dimension_numbers = #tpu.dot_dimension_numbers<[1], [0], [0], [1], [0, 0, 1, 1], [], []>} : vector<8x256xbf16>, vector<256x256xbf16>, vector<8x256xf32> -> vector<8x256xf32>
    %48 = vector.broadcast %44 : vector<1x256xf32> to vector<8x256xf32>
    %49 = arith.addf %47, %48 : vector<8x256xf32>
    %50 = arith.truncf %49 : vector<8x256xf32> to vector<8x256xbf16>
    %c2_35 = arith.constant 2 : index
    %c0_36 = arith.constant 0 : index
    %c0_37 = arith.constant 0 : index
    %51 = vector.load %arg4[%c2_35, %c0_36, %c0_37] : memref<3x256x128xbf16, #tpu.memory_space<vmem>>, vector<1x256x128xbf16>
    %52 = vector.shape_cast %51 : vector<1x256x128xbf16> to vector<256x128xbf16>
    %cst_38 = arith.constant dense<0.000000e+00> : vector<8x128xf32>
    %53 = tpu.matmul %50, %52, %cst_38 {dimension_numbers = #tpu.dot_dimension_numbers<[1], [0], [0], [1], [0, 0, 1, 1], [], []>} : vector<8x256xbf16>, vector<256x128xbf16>, vector<8x128xf32> -> vector<8x128xf32>
    %54 = arith.addf %41, %53 : vector<8x128xf32>
    %55 = vector.broadcast %2 : vector<1x128xf32> to vector<8x128xf32>
    %56 = arith.addf %54, %55 : vector<8x128xf32>
    %57 = arith.truncf %56 : vector<8x128xf32> to vector<8x128xbf16>
    %c0_39 = arith.constant 0 : index
    %c0_40 = arith.constant 0 : index
    %58 = vector.load %arg5[%c0_39, %c0_40] : memref<128x128xbf16, #tpu.memory_space<vmem>>, vector<128x128xbf16>
    %cst_41 = arith.constant dense<0.000000e+00> : vector<8x128xf32>
    %59 = tpu.matmul %57, %58, %cst_41 {dimension_numbers = #tpu.dot_dimension_numbers<[1], [0], [0], [1], [0, 0, 1, 1], [], []>} : vector<8x128xbf16>, vector<128x128xbf16>, vector<8x128xf32> -> vector<8x128xf32>
    %60 = vector.broadcast %3 : vector<1x128xf32> to vector<8x128xf32>
    %61 = arith.addf %59, %60 : vector<8x128xf32>
    %c0_42 = arith.constant 0 : index
    %c0_43 = arith.constant 0 : index
    %62 = vector.load %arg7[%c0_42, %c0_43] : memref<8x128xf32, #tpu.memory_space<vmem>>, vector<8x128xf32>
    tpu.vector_store %arg7[%c0_42, %c0_43], %61 {strides = array<i32>} : memref<8x128xf32, #tpu.memory_space<vmem>>, vector<8x128xf32>,
    return
  }
}

</mosaic_0001>

<bundles_post_ra>
// kernel: tpu_custom_call.1
= control target key start
LH: loop header
LB: loop body
LE: loop exit
PB: predicated region body
PF: predicated region fallthrough
CT: control target
= control target key end

     0   :  { %12 = vsyncpa [#allocation3], 0  ;;  %s4587_s0 = inlined_call_operand.hbm [shape: f32[8,128], index: 0, kind: input, shape index: {}]   ;;  %s4588_s1 = inlined_call_operand.hbm [shape: bf16[128,512], index: 1, kind: input, shape index: {}]   ;;  %s4589_s2 = inlined_call_operand.hbm [shape: bf16[512,768], index: 2, kind: input, shape index: {}]   ;;  %s4590_s3 = inlined_call_operand.hbm [shape: bf16[3,256,256], index: 3, kind: input, shape index: {}]   ;;  %s4591_s4 = inlined_call_operand.hbm [shape: bf16[3,256,128], index: 4, kind: input, shape index: {}]   ;;  %s4592_s5 = inlined_call_operand.hbm [shape: bf16[128,128], index: 5, kind: input, shape index: {}]   ;;  %s4593_s6 = inlined_call_operand.hbm [shape: f32[8,768], index: 6, kind: input, shape index: {}]   ;;  %s4594_s7 = inlined_call_operand.hbm [shape: f32[8,128], index: 7, kind: output, shape index: {}]  }
   0x1   :  { %13 = vsyncpa [#allocation6], 0 }
   0x2   :  { %14 = vsyncpa [#allocation9], 0 }
   0x3   :  { %15 = vsyncpa [#allocation12], 0 }
   0x4   :  { %16 = vsyncpa [#allocation4], 0  ;;  %s4436_s24 = smov [#allocation5]  }
   0x5   :  { %s32_s25 = sshll.u32 %s4436_s24, 4  ;;  %s33_s25 = int_to_ptr.vmem [resolvable:$true] %s32_s25 }
   0x6   :  { %s4274_s26 = scalar_lea.vmem %s33_s25, 4096  ;;  %p4279_p1 = scmp.lt.s32.totalorder %s33_s25, %s33_s25 }
   0x7   :  { %p4275_p0 = scmp.ne.s32.totalorder %s33_s25, %s4274_s26  ;;  %p4280_p2 = scmp.lt.s32.totalorder %s4274_s26, %s4274_s26 }
   0x9   :  { %p4281_p3 = por %p4280_p2, %p4279_p1 }
   0xb   :  { %p4282_p4 = pnand %p4281_p3, %p4275_p0 }
   0xd   :  { %4285 = shalt.err (!%p4282_p4)
}
   0xe   :  { %s4437_s27 = smov 256   ;;  %s4438_s28 = smov 16  }
   0xf   :  { %38 = dma.hbm_to_vmem [thread:$0]  %s4588_s1, 4096, %s33_s25, [#allocation6], %s4437_s27, %s4437_s27, %s4438_s28  }
  0x10   :  { %s4439_s8 = smov [#allocation8]  }
  0x11   :  { %s56_s9 = sshll.u32 %s4439_s8, 4  ;;  %s57_s9 = int_to_ptr.vmem [resolvable:$true] %s56_s9 }
  0x12   :  { %s4294_s10 = scalar_lea.vmem %s57_s9, 12288  ;;  %p4299_p6 = scmp.lt.s32.totalorder %s57_s9, %s57_s9 }
  0x13   :  { %p4295_p5 = scmp.ne.s32.totalorder %s57_s9, %s4294_s10  ;;  %p4300_p7 = scmp.lt.s32.totalorder %s4294_s10, %s4294_s10 }
  0x15   :  { %p4301_p8 = por %p4300_p7, %p4299_p6 }
  0x17   :  { %p4302_p9 = pnand %p4301_p8, %p4295_p5 }
  0x19   :  { %4305 = shalt.err (!%p4302_p9)
}
  0x1a   :  { %s4440_s11 = smov 128   ;;  %s4441_s12 = smov 8  }
  0x1b   :  { %62 = dma.hbm_to_vmem [thread:$0]  %s4590_s3, 12288, %s57_s9, [#allocation9], %s4440_s11, %s4440_s11, %s4441_s12  }
  0x1c   :  { %s4442_s15 = smov [#allocation11]   ;;  %s4443_s17 = smov [#allocation2]  }
  0x1d   :  { %s80_s16 = sshll.u32 %s4442_s15, 4  ;;  %s23_s1 = sshll.u32 %s4443_s17, 4  ;;  %s81_s16 = int_to_ptr.vmem [resolvable:$true] %s80_s16  ;;  %s24_s1 = int_to_ptr.vmem [resolvable:$true] %s23_s1 }
  0x1e   :  { %s4314_s18 = scalar_lea.vmem %s81_s16, 1024  ;;  %p4319_p11 = scmp.lt.s32.totalorder %s81_s16, %s81_s16 }
  0x1f   :  { %p4315_p10 = scmp.ne.s32.totalorder %s81_s16, %s4314_s18  ;;  %p4320_p12 = scmp.lt.s32.totalorder %s4314_s18, %s4314_s18 }
  0x21   :  { %p4321_p13 = por %p4320_p12, %p4319_p11 }
  0x23   :  { %p4322_p0 = pnand %p4321_p13, %p4315_p10 }
  0x25   :  { %4325 = shalt.err (!%p4322_p0)
}
  0x26   :  { %s4444_s19 = smov 64   ;;  %s4445_s20 = smov 4  }
  0x27   :  { %86 = dma.hbm_to_vmem [thread:$0]  %s4592_s5, 1024, %s81_s16, [#allocation12], %s4444_s19, %s4444_s19, %s4445_s20  }
  0x28   :  { %s4334_s22 = scalar_lea.vmem %s24_s1, 128  ;;  %p4339_p2 = scmp.lt.s32.totalorder %s24_s1, %s24_s1 }
  0x29   :  { %p4335_p1 = scmp.ne.s32.totalorder %s24_s1, %s4334_s22  ;;  %p4340_p3 = scmp.lt.s32.totalorder %s4334_s22, %s4334_s22 }
  0x2b   :  { %p4341_p4 = por %p4340_p3, %p4339_p2 }
  0x2d   :  { %p4342_p5 = pnand %p4341_p4, %p4335_p1 }
  0x2f   :  { %4345 = shalt.err (!%p4342_p5)
}
  0x30   :  { %26 = dma.hbm_to_vmem [thread:$0]  %s4587_s0, 128, %s24_s1, [#allocation3]  }
  0x31   :  { %s4446_s25 = smov [#allocation7]  }
  0x32   :  { %s44_s26 = sshll.u32 %s4446_s25, 4  ;;  %s45_s26 = int_to_ptr.vmem [resolvable:$true] %s44_s26 }
  0x33   :  { %s4354_s27 = scalar_lea.vmem %s45_s26, 24576  ;;  %p4359_p7 = scmp.lt.s32.totalorder %s45_s26, %s45_s26 }
  0x34   :  { %p4355_p6 = scmp.ne.s32.totalorder %s45_s26, %s4354_s27  ;;  %p4360_p8 = scmp.lt.s32.totalorder %s4354_s27, %s4354_s27 }
  0x36   :  { %p4361_p9 = por %p4360_p8, %p4359_p7 }
  0x38   :  { %p4362_p10 = pnand %p4361_p9, %p4355_p6 }
  0x3a   :  { %4365 = shalt.err (!%p4362_p10)
}
  0x3b   :  { %s4447_s5 = smov 384   ;;  %s4448_s28 = smov 24  }
  0x3c   :  { %50 = dma.hbm_to_vmem [thread:$0]  %s4589_s2, 24576, %s45_s26, [#allocation6], %s4447_s5, %s4447_s5, %s4448_s28  }
  0x3d   :  { %s4449_s8 = smov [#allocation10]   ;;  %s4450_s0 = smov [#allocation13]  }
  0x3e   :  { %s68_s9 = sshll.u32 %s4449_s8, 4  ;;  %s93_s10 = sshll.u32 %s4450_s0, 4  ;;  %s69_s9 = int_to_ptr.vmem [resolvable:$true] %s68_s9  ;;  %s94_s10 = int_to_ptr.vmem [resolvable:$true] %s93_s10 }
  0x3f   :  { %s4374_s11 = scalar_lea.vmem %s69_s9, 6144  ;;  %p4379_p12 = scmp.lt.s32.totalorder %s69_s9, %s69_s9 }
  0x40   :  { %p4375_p11 = scmp.ne.s32.totalorder %s69_s9, %s4374_s11  ;;  %p4380_p13 = scmp.lt.s32.totalorder %s4374_s11, %s4374_s11 }
  0x42   :  { %p4381_p0 = por %p4380_p13, %p4379_p12 }
  0x44   :  { %p4382_p1 = pnand %p4381_p0, %p4375_p11 }
  0x46   :  { %4385 = shalt.err (!%p4382_p1)
}
  0x47   :  { %74 = dma.hbm_to_vmem [thread:$0]  %s4591_s4, 6144, %s69_s9, [#allocation9], %s4444_s19, %s4444_s19, %s4445_s20  }
  0x48   :  { %s4394_s2 = scalar_lea.vmem %s94_s10, 768  ;;  %p4399_p3 = scmp.lt.s32.totalorder %s94_s10, %s94_s10 }
  0x49   :  { %p4395_p2 = scmp.ne.s32.totalorder %s94_s10, %s4394_s2  ;;  %p4400_p4 = scmp.lt.s32.totalorder %s4394_s2, %s4394_s2 }
  0x4b   :  { %p4401_p5 = por %p4400_p4, %p4399_p3 }
  0x4d   :  { %p4402_p6 = pnand %p4401_p5, %p4395_p2 }
  0x4f   :  { %4405 = shalt.err (!%p4402_p6)
}
  0x50   :  { %96 = dma.hbm_to_vmem [thread:$0]  %s4593_s6, 768, %s94_s10, [#allocation12]  }
  0x51   :  { %4426 = dma.done.wait [#allocation3], 128  }
  0x52   :  { %4427 = vsyncadd [#allocation3], 4294967168 }
  0x53   :  { %4428 = dma.done.wait [#allocation6], 28672  }
  0x54   :  { %4429 = vsyncadd [#allocation6], 4294938624 }
  0x55   :  { %4430 = dma.done.wait [#allocation9], 18432  }
  0x56   :  { %4431 = vsyncadd [#allocation9], 4294948864 }
  0x57   :  { %4432 = dma.done.wait [#allocation12], 1792  }
  0x58   :  { %4433 = vsyncadd [#allocation12], 4294965504  ;;  %v4451_v0 = vmov 0   ;;  %v3730_v1 = vld [vmem:[#allocation5 + $0xe4] ss:$16 sps:$4 sm:$0xff]   ;;  %v126_v33 = vld [vmem:[#allocation2] sm:$0xff] }
  0x59   :  { %373 = vmatprep.mubr.bf16.mxu0 %v4451_v0  ;;  %414 = vmatprep.mubr.bf16.mxu1 %v4451_v0  ;;  %v3732_v2 = vld [vmem:[#allocation5 + $0xec] ss:$16 sps:$4 sm:$0xff]   ;;  %v3734_v3 = vld [vmem:[#allocation5 + $0xe0] ss:$16 sps:$4 sm:$0xff]   ;;  %v3735_v4 = vld [vmem:[#allocation5 + $0xe8] ss:$16 sps:$4 sm:$0xff]   ;;  %v127_v36 = vpack.c.bf16 %v126_v33, %v126_v33 }
  0x5a   :  { %341 = vmatprep.subr.bf16.mxu0 %v3730_v1  ;;  %382 = vmatprep.subr.bf16.mxu1 %v3732_v2  ;;  %v3736_v5 = vld [vmem:[#allocation5 + $0xc4] ss:$16 sps:$4 sm:$0xff]   ;;  %v3738_v6 = vld [vmem:[#allocation5 + $0xcc] ss:$16 sps:$4 sm:$0xff]   ;;  %v3740_v7 = vld [vmem:[#allocation5 + $0xc0] ss:$16 sps:$4 sm:$0xff]  }
  0x5b   :  { %342 = vmatpush1.bf16.msra.mxu0 %v3734_v3  ;;  %383 = vmatpush1.bf16.msra.mxu1 %v3735_v4  ;;  %v3741_v8 = vld [vmem:[#allocation5 + $0xc8] ss:$16 sps:$4 sm:$0xff]   ;;  %v3742_v9 = vld [vmem:[#allocation5 + $0xa4] ss:$16 sps:$4 sm:$0xff]   ;;  %v3744_v10 = vld [vmem:[#allocation5 + $0xac] ss:$16 sps:$4 sm:$0xff]  }
  0x5c   :  { %343 = vmatprep.subr.bf16.mxu0 %v3736_v5  ;;  %384 = vmatprep.subr.bf16.mxu1 %v3738_v6  ;;  %v3746_v11 = vld [vmem:[#allocation5 + $0xa0] ss:$16 sps:$4 sm:$0xff]   ;;  %v3747_v12 = vld [vmem:[#allocation5 + $0xa8] ss:$16 sps:$4 sm:$0xff]   ;;  %v3748_v13 = vld [vmem:[#allocation5 + $0x84] ss:$16 sps:$4 sm:$0xff]  }
  0x5d   :  { %v3750_v14 = vld [vmem:[#allocation5 + $0x8c] ss:$16 sps:$4 sm:$0xff]   ;;  %v3752_v15 = vld [vmem:[#allocation5 + $0x80] ss:$16 sps:$4 sm:$0xff]   ;;  %v3753_v16 = vld [vmem:[#allocation5 + $0x88] ss:$16 sps:$4 sm:$0xff]  }
  0x5e   :  { %v3754_v17 = vld [vmem:[#allocation5 + $0x64] ss:$16 sps:$4 sm:$0xff]   ;;  %v3756_v18 = vld [vmem:[#allocation5 + $0x6c] ss:$16 sps:$4 sm:$0xff]   ;;  %v3758_v19 = vld [vmem:[#allocation5 + $0x60] ss:$16 sps:$4 sm:$0xff]  }
  0x5f   :  { %344 = vmatpush1.bf16.msra.mxu0 %v3740_v7  ;;  %385 = vmatpush1.bf16.msra.mxu1 %v3741_v8  ;;  %v3759_v20 = vld [vmem:[#allocation5 + $0x68] ss:$16 sps:$4 sm:$0xff]   ;;  %v3760_v21 = vld [vmem:[#allocation5 + $0x44] ss:$16 sps:$4 sm:$0xff]   ;;  %v3762_v22 = vld [vmem:[#allocation5 + $0x4c] ss:$16 sps:$4 sm:$0xff]  }
  0x60   :  { %345 = vmatprep.subr.bf16.mxu0 %v3742_v9  ;;  %386 = vmatprep.subr.bf16.mxu1 %v3744_v10  ;;  %v3764_v23 = vld [vmem:[#allocation5 + $0x40] ss:$16 sps:$4 sm:$0xff]   ;;  %v3765_v24 = vld [vmem:[#allocation5 + $0x48] ss:$16 sps:$4 sm:$0xff]   ;;  %v3766_v25 = vld [vmem:[#allocation5 + $0x24] ss:$16 sps:$4 sm:$0xff]  }
  0x61   :  { %v3768_v26 = vld [vmem:[#allocation5 + $0x2c] ss:$16 sps:$4 sm:$0xff]   ;;  %v3770_v27 = vld [vmem:[#allocation5 + $0x20] ss:$16 sps:$4 sm:$0xff]   ;;  %v3771_v28 = vld [vmem:[#allocation5 + $0x28] ss:$16 sps:$4 sm:$0xff]  }
  0x62   :  { %v3772_v29 = vld [vmem:[#allocation5 + $0x4] ss:$16 sps:$4 sm:$0xff]   ;;  %v3774_v30 = vld [vmem:[#allocation5 + $0xc] ss:$16 sps:$4 sm:$0xff]   ;;  %v3776_v31 = vld [vmem:[#allocation5] ss:$16 sps:$4 sm:$0xff]  }
  0x63   :  { %346 = vmatpush1.bf16.msra.mxu0 %v3746_v11  ;;  %387 = vmatpush1.bf16.msra.mxu1 %v3747_v12  ;;  %v3777_v32 = vld [vmem:[#allocation5 + $0x8] ss:$16 sps:$4 sm:$0xff]   ;;  %v3780_v34 = vld [vmem:[#allocation7 + $0x154] ss:$24 sps:$4 sm:$0xff]   ;;  %v3786_v39 = vld [vmem:[#allocation7 + $0x124] ss:$24 sps:$4 sm:$0xff]  }
  0x64   :  { %347 = vmatprep.subr.bf16.mxu0 %v3748_v13  ;;  %388 = vmatprep.subr.bf16.mxu1 %v3750_v14  ;;  %v3783_v35 = vld [vmem:[#allocation7 + $0x454] ss:$24 sps:$4 sm:$0xff]   ;;  %v3778_v37 = vld [vmem:[#allocation7 + $0x150] ss:$24 sps:$4 sm:$0xff]   ;;  %v3789_v40 = vld [vmem:[#allocation7 + $0x424] ss:$24 sps:$4 sm:$0xff]  }
  0x65   :  { %v3781_v38 = vld [vmem:[#allocation7 + $0x450] ss:$24 sps:$4 sm:$0xff]   ;;  %v3784_v41 = vld [vmem:[#allocation7 + $0x120] ss:$24 sps:$4 sm:$0xff]   ;;  %v3792_v43 = vld [vmem:[#allocation7 + $0xf4] ss:$24 sps:$4 sm:$0xff]  }
  0x66   :  { %v3787_v42 = vld [vmem:[#allocation7 + $0x420] ss:$24 sps:$4 sm:$0xff]   ;;  %v3795_v44 = vld [vmem:[#allocation7 + $0x3f4] ss:$24 sps:$4 sm:$0xff]   ;;  %v3790_v45 = vld [vmem:[#allocation7 + $0xf0] ss:$24 sps:$4 sm:$0xff]  }
  0x67   :  { %348 = vmatpush1.bf16.msra.mxu0 %v3752_v15  ;;  %389 = vmatpush1.bf16.msra.mxu1 %v3753_v16  ;;  %v3793_v46 = vld [vmem:[#allocation7 + $0x3f0] ss:$24 sps:$4 sm:$0xff]   ;;  %v3798_v47 = vld [vmem:[#allocation7 + $0xc4] ss:$24 sps:$4 sm:$0xff]   ;;  %v3796_v49 = vld [vmem:[#allocation7 + $0xc0] ss:$24 sps:$4 sm:$0xff]  }
  0x68   :  { %349 = vmatprep.subr.bf16.mxu0 %v3754_v17  ;;  %390 = vmatprep.subr.bf16.mxu1 %v3756_v18  ;;  %v3801_v48 = vld [vmem:[#allocation7 + $0x3c4] ss:$24 sps:$4 sm:$0xff]   ;;  %v3799_v50 = vld [vmem:[#allocation7 + $0x3c0] ss:$24 sps:$4 sm:$0xff]   ;;  %v3804_v51 = vld [vmem:[#allocation7 + $0x94] ss:$24 sps:$4 sm:$0xff]  }
  0x69   :  { %v3807_v52 = vld [vmem:[#allocation7 + $0x394] ss:$24 sps:$4 sm:$0xff]   ;;  %v3802_v53 = vld [vmem:[#allocation7 + $0x90] ss:$24 sps:$4 sm:$0xff]   ;;  %v3810_v55 = vld [vmem:[#allocation7 + $0x64] ss:$24 sps:$4 sm:$0xff]  }
  0x6a   :  { %v3805_v54 = vld [vmem:[#allocation7 + $0x390] ss:$24 sps:$4 sm:$0xff]   ;;  %v3813_v56 = vld [vmem:[#allocation7 + $0x364] ss:$24 sps:$4 sm:$0xff]   ;;  %v3808_v57 = vld [vmem:[#allocation7 + $0x60] ss:$24 sps:$4 sm:$0xff]  }
  0x6b   :  { %350 = vmatpush1.bf16.msra.mxu0 %v3758_v19  ;;  %391 = vmatpush1.bf16.msra.mxu1 %v3759_v20  ;;  %v3811_v58 = vld [vmem:[#allocation7 + $0x360] ss:$24 sps:$4 sm:$0xff]   ;;  %v3816_v59 = vld [vmem:[#allocation7 + $0x34] ss:$24 sps:$4 sm:$0xff]   ;;  %v3814_v61 = vld [vmem:[#allocation7 + $0x30] ss:$24 sps:$4 sm:$0xff]  }
  0x6c   :  { %351 = vmatprep.subr.bf16.mxu0 %v3760_v21  ;;  %392 = vmatprep.subr.bf16.mxu1 %v3762_v22  ;;  %v3819_v60 = vld [vmem:[#allocation7 + $0x334] ss:$24 sps:$4 sm:$0xff]   ;;  %v3817_v62 = vld [vmem:[#allocation7 + $0x330] ss:$24 sps:$4 sm:$0xff]   ;;  %v3822_v63 = vld [vmem:[#allocation7 + $0x4] ss:$24 sps:$4 sm:$0xff]  }
  0x6d   :  { %v3825_v0 = vld [vmem:[#allocation7 + $0x304] ss:$24 sps:$4 sm:$0xff]   ;;  %v3820_v1 = vld [vmem:[#allocation7] ss:$24 sps:$4 sm:$0xff]   ;;  %v3828_v3 = vld [vmem:[#allocation7 + $0x2d4] ss:$24 sps:$4 sm:$0xff]  }
  0x6e   :  { %v3823_v2 = vld [vmem:[#allocation7 + $0x300] ss:$24 sps:$4 sm:$0xff]   ;;  %v3831_v4 = vld [vmem:[#allocation7 + $0x5d4] ss:$24 sps:$4 sm:$0xff]   ;;  %v3826_v5 = vld [vmem:[#allocation7 + $0x2d0] ss:$24 sps:$4 sm:$0xff]  }
  0x6f   :  { %352 = vmatpush1.bf16.msra.mxu0 %v3764_v23  ;;  %393 = vmatpush1.bf16.msra.mxu1 %v3765_v24  ;;  %v3829_v6 = vld [vmem:[#allocation7 + $0x5d0] ss:$24 sps:$4 sm:$0xff]   ;;  %v3834_v7 = vld [vmem:[#allocation7 + $0x2a4] ss:$24 sps:$4 sm:$0xff]   ;;  %v3832_v9 = vld [vmem:[#allocation7 + $0x2a0] ss:$24 sps:$4 sm:$0xff]  }
  0x70   :  { %353 = vmatprep.subr.bf16.mxu0 %v3766_v25  ;;  %394 = vmatprep.subr.bf16.mxu1 %v3768_v26  ;;  %v3837_v8 = vld [vmem:[#allocation7 + $0x5a4] ss:$24 sps:$4 sm:$0xff]   ;;  %v3835_v10 = vld [vmem:[#allocation7 + $0x5a0] ss:$24 sps:$4 sm:$0xff]   ;;  %v3840_v11 = vld [vmem:[#allocation7 + $0x274] ss:$24 sps:$4 sm:$0xff]  }
  0x71   :  { %v3843_v12 = vld [vmem:[#allocation7 + $0x574] ss:$24 sps:$4 sm:$0xff]   ;;  %v3838_v13 = vld [vmem:[#allocation7 + $0x270] ss:$24 sps:$4 sm:$0xff]   ;;  %v3846_v15 = vld [vmem:[#allocation7 + $0x244] ss:$24 sps:$4 sm:$0xff]  }
  0x72   :  { %v3841_v14 = vld [vmem:[#allocation7 + $0x570] ss:$24 sps:$4 sm:$0xff]   ;;  %v3849_v16 = vld [vmem:[#allocation7 + $0x544] ss:$24 sps:$4 sm:$0xff]   ;;  %v3844_v17 = vld [vmem:[#allocation7 + $0x240] ss:$24 sps:$4 sm:$0xff]  }
  0x73   :  { %354 = vmatpush1.bf16.msra.mxu0 %v3770_v27  ;;  %395 = vmatpush1.bf16.msra.mxu1 %v3771_v28  ;;  %v3847_v18 = vld [vmem:[#allocation7 + $0x540] ss:$24 sps:$4 sm:$0xff]   ;;  %v3852_v19 = vld [vmem:[#allocation7 + $0x214] ss:$24 sps:$4 sm:$0xff]   ;;  %v3850_v21 = vld [vmem:[#allocation7 + $0x210] ss:$24 sps:$4 sm:$0xff]  }
  0x74   :  { %355 = vmatprep.subr.bf16.mxu0 %v3772_v29  ;;  %396 = vmatprep.subr.bf16.mxu1 %v3774_v30  ;;  %v3855_v20 = vld [vmem:[#allocation7 + $0x514] ss:$24 sps:$4 sm:$0xff]   ;;  %v3853_v22 = vld [vmem:[#allocation7 + $0x510] ss:$24 sps:$4 sm:$0xff]   ;;  %v3858_v23 = vld [vmem:[#allocation7 + $0x1e4] ss:$24 sps:$4 sm:$0xff]  }
  0x75   :  { %v3861_v24 = vld [vmem:[#allocation7 + $0x4e4] ss:$24 sps:$4 sm:$0xff]   ;;  %v3856_v25 = vld [vmem:[#allocation7 + $0x1e0] ss:$24 sps:$4 sm:$0xff]   ;;  %v3864_v27 = vld [vmem:[#allocation7 + $0x1b4] ss:$24 sps:$4 sm:$0xff]  }
  0x76   :  { %v3859_v26 = vld [vmem:[#allocation7 + $0x4e0] ss:$24 sps:$4 sm:$0xff]   ;;  %v3867_v28 = vld [vmem:[#allocation7 + $0x4b4] ss:$24 sps:$4 sm:$0xff]   ;;  %v3862_v29 = vld [vmem:[#allocation7 + $0x1b0] ss:$24 sps:$4 sm:$0xff]  }
  0x77   :  { %356 = vmatpush1.bf16.msra.mxu0 %v3776_v31  ;;  %397 = vmatpush1.bf16.msra.mxu1 %v3777_v32  ;;  %v3865_v30 = vld [vmem:[#allocation7 + $0x4b0] ss:$24 sps:$4 sm:$0xff]   ;;  %v3870_v31 = vld [vmem:[#allocation7 + $0x184] ss:$24 sps:$4 sm:$0xff]   ;;  %v3868_v33 = vld [vmem:[#allocation7 + $0x180] ss:$24 sps:$4 sm:$0xff]  }
  0x78   :  { %1610 = vmatprep.subr.bf16.mxu0 %v3780_v34  ;;  %1651 = vmatprep.subr.bf16.mxu1 %v3783_v35  ;;  %v3873_v32 = vld [vmem:[#allocation7 + $0x484] ss:$24 sps:$4 sm:$0xff]   ;;  %v3871_v34 = vld [vmem:[#allocation7 + $0x480] ss:$24 sps:$4 sm:$0xff]   ;;  %vm4453_vm0 = vmmov 0   ;;  %s4454_s4 = smov [#allocation14]  }
  0x79   :  { %v3876_v35 = vld [vmem:[#allocation7 + $0x15c] ss:$24 sps:$4 sm:$0xff]   ;;  %s3228_s6 = sshll.u32 %s4454_s4, 4  ;;  %s3229_s6 = int_to_ptr.vmem [resolvable:$true] %s3228_s6 }
  0x7a   :  { %374 = vmatmul.mubr.bf16.vlgmr.msra.gmra.mxu0 %v127_v36  ;;  %415 = vmatmul.mubr.bf16.vlgmr.msra.gmra.mxu1 %v127_v36  ;;  %v3879_v36 = vld [vmem:[#allocation7 + $0x45c] ss:$24 sps:$4 sm:$0xff]   ;;  %s4406_s16 = scalar_lea.vmem %s3229_s6, 128  ;;  %p4411_p8 = scmp.lt.s32.totalorder %s3229_s6, %s3229_s6 }
  0x7b   :  { %1611 = vmatpush1.bf16.msra.mxu0 %v3778_v37  ;;  %1652 = vmatpush1.bf16.msra.mxu1 %v3781_v38  ;;  %v161_v37 = vlaneseq  ;;  %p4407_p7 = scmp.ne.s32.totalorder %s3229_s6, %s4406_s16  ;;  %p4412_p9 = scmp.lt.s32.totalorder %s4406_s16, %s4406_s16 }
  0x7c   :  { %1612 = vmatprep.subr.bf16.mxu0 %v3786_v39  ;;  %1653 = vmatprep.subr.bf16.mxu1 %v3789_v40 }
  0x7d   :  { %v4522_v38 = vshrl.u32 %v161_v37, 7  ;;  %v3931_v37 = vld [vmem:[#allocation7 + $0x5a8] ss:$24 sps:$4 sm:$0xff]   ;;  %p4413_p10 = por %p4412_p9, %p4411_p8 }
  0x7f   :  { %1613 = vmatpush1.bf16.msra.mxu0 %v3784_v41  ;;  %1654 = vmatpush1.bf16.msra.mxu1 %v3787_v42  ;;  %v171_v39 = vsub.s32 2, %v4522_v38  ;;  %v4526_v40 = vsub.s32 0, %v4522_v38  ;;  %v119_v41 = vld [vmem:[#allocation13] ss:$8 sm:$0xf]  ;;  %v4529_v42 = vsub.s32 1, %v4522_v38  ;;  %p4414_p11 = pnand %p4413_p10, %p4407_p7 }
  0x80   :  { %1614 = vmatprep.subr.bf16.mxu0 %v3792_v43  ;;  %1655 = vmatprep.subr.bf16.mxu1 %v3795_v44  ;;  %v175_v43 = vsub.s32 3, %v4522_v38 }
  0x81   :  { %v172_v44 = vrot.slane %v119_v41, %v171_v39 }
  0x83   :  { %1615 = vmatpush1.bf16.msra.mxu0 %v3790_v45  ;;  %1656 = vmatpush1.bf16.msra.mxu1 %v3793_v46  ;;  %v164_v45 = vrot.slane %v119_v41, %v4526_v40  ;;  %v168_v46 = vrot.slane %v119_v41, %v4529_v42 }
  0x84   :  { %1616 = vmatprep.subr.bf16.mxu0 %v3798_v47  ;;  %1657 = vmatprep.subr.bf16.mxu1 %v3801_v48  ;;  %v176_v47 = vrot.slane %v119_v41, %v175_v43  ;;  %v3936_v41 = vld [vmem:[#allocation7 + $0x27c] ss:$24 sps:$4 sm:$0xff]  }
  0x87   :  { %1617 = vmatpush1.bf16.msra.mxu0 %v3796_v49  ;;  %1658 = vmatpush1.bf16.msra.mxu1 %v3799_v50 }
  0x88   :  { %1618 = vmatprep.subr.bf16.mxu0 %v3804_v51  ;;  %1659 = vmatprep.subr.bf16.mxu1 %v3807_v52 }
  0x8b   :  { %1619 = vmatpush1.bf16.msra.mxu0 %v3802_v53  ;;  %1660 = vmatpush1.bf16.msra.mxu1 %v3805_v54 }
  0x8c   :  { %1620 = vmatprep.subr.bf16.mxu0 %v3810_v55  ;;  %1661 = vmatprep.subr.bf16.mxu1 %v3813_v56 }
  0x8f   :  { %1621 = vmatpush1.bf16.msra.mxu0 %v3808_v57  ;;  %1662 = vmatpush1.bf16.msra.mxu1 %v3811_v58 }
  0x90   :  { %1622 = vmatprep.subr.bf16.mxu0 %v3816_v59  ;;  %1663 = vmatprep.subr.bf16.mxu1 %v3819_v60 }
  0x93   :  { %1623 = vmatpush1.bf16.msra.mxu0 %v3814_v61  ;;  %1664 = vmatpush1.bf16.msra.mxu1 %v3817_v62  ;;  %v3874_v61 = vld [vmem:[#allocation7 + $0x158] ss:$24 sps:$4 sm:$0xff]  }
  0x94   :  { %1624 = vmatprep.subr.bf16.mxu0 %v3822_v63  ;;  %1665 = vmatprep.subr.bf16.mxu1 %v3825_v0  ;;  %v3877_v62 = vld [vmem:[#allocation7 + $0x458] ss:$24 sps:$4 sm:$0xff]  }
  0x97   :  { %1625 = vmatpush1.bf16.msra.mxu0 %v3820_v1  ;;  %1666 = vmatpush1.bf16.msra.mxu1 %v3823_v2  ;;  %v3882_v2 = vld [vmem:[#allocation7 + $0x12c] ss:$24 sps:$4 sm:$0xff]  }
  0x98   :  { %1626 = vmatprep.subr.bf16.mxu0 %v3828_v3  ;;  %1667 = vmatprep.subr.bf16.mxu1 %v3831_v4  ;;  %v3885_v3 = vld [vmem:[#allocation7 + $0x42c] ss:$24 sps:$4 sm:$0xff]   ;;  %v3880_v4 = vld [vmem:[#allocation7 + $0x128] ss:$24 sps:$4 sm:$0xff]  }
  0x9b   :  { %1627 = vmatpush2.bf16.msra.mxu0 %v3826_v5  ;;  %1668 = vmatpush2.bf16.msra.mxu1 %v3829_v6  ;;  %v3883_v5 = vld [vmem:[#allocation7 + $0x428] ss:$24 sps:$4 sm:$0xff]   ;;  %v3888_v6 = vld [vmem:[#allocation7 + $0xfc] ss:$24 sps:$4 sm:$0xff]  }
  0x9c   :  { %1628 = vmatprep.subr.bf16.mxu0 %v3834_v7  ;;  %1669 = vmatprep.subr.bf16.mxu1 %v3837_v8  ;;  %v3891_v7 = vld [vmem:[#allocation7 + $0x3fc] ss:$24 sps:$4 sm:$0xff]   ;;  %v3886_v8 = vld [vmem:[#allocation7 + $0xf8] ss:$24 sps:$4 sm:$0xff]  }
  0x9f   :  { %1629 = vmatpush2.bf16.msra.mxu0 %v3832_v9  ;;  %1670 = vmatpush2.bf16.msra.mxu1 %v3835_v10  ;;  %v3889_v9 = vld [vmem:[#allocation7 + $0x3f8] ss:$24 sps:$4 sm:$0xff]   ;;  %v3894_v10 = vld [vmem:[#allocation7 + $0xcc] ss:$24 sps:$4 sm:$0xff]  }
  0xa0   :  { %1630 = vmatprep.subr.bf16.mxu0 %v3840_v11  ;;  %1671 = vmatprep.subr.bf16.mxu1 %v3843_v12  ;;  %v3897_v11 = vld [vmem:[#allocation7 + $0x3cc] ss:$24 sps:$4 sm:$0xff]   ;;  %v3892_v12 = vld [vmem:[#allocation7 + $0xc8] ss:$24 sps:$4 sm:$0xff]  }
  0xa3   :  { %1631 = vmatpush2.bf16.msra.mxu0 %v3838_v13  ;;  %1672 = vmatpush2.bf16.msra.mxu1 %v3841_v14  ;;  %v3895_v13 = vld [vmem:[#allocation7 + $0x3c8] ss:$24 sps:$4 sm:$0xff]   ;;  %v3900_v14 = vld [vmem:[#allocation7 + $0x9c] ss:$24 sps:$4 sm:$0xff]  }
  0xa4   :  { %1632 = vmatprep.subr.bf16.mxu0 %v3846_v15  ;;  %1673 = vmatprep.subr.bf16.mxu1 %v3849_v16  ;;  %v3903_v15 = vld [vmem:[#allocation7 + $0x39c] ss:$24 sps:$4 sm:$0xff]   ;;  %v3898_v16 = vld [vmem:[#allocation7 + $0x98] ss:$24 sps:$4 sm:$0xff]  }
  0xa7   :  { %1633 = vmatpush2.bf16.msra.mxu0 %v3844_v17  ;;  %1674 = vmatpush2.bf16.msra.mxu1 %v3847_v18  ;;  %v3901_v17 = vld [vmem:[#allocation7 + $0x398] ss:$24 sps:$4 sm:$0xff]   ;;  %v3906_v18 = vld [vmem:[#allocation7 + $0x6c] ss:$24 sps:$4 sm:$0xff]  }
  0xa8   :  { %1634 = vmatprep.subr.bf16.mxu0 %v3852_v19  ;;  %1675 = vmatprep.subr.bf16.mxu1 %v3855_v20  ;;  %v3909_v19 = vld [vmem:[#allocation7 + $0x36c] ss:$24 sps:$4 sm:$0xff]   ;;  %v3904_v20 = vld [vmem:[#allocation7 + $0x68] ss:$24 sps:$4 sm:$0xff]  }
  0xab   :  { %1635 = vmatpush2.bf16.msra.mxu0 %v3850_v21  ;;  %1676 = vmatpush2.bf16.msra.mxu1 %v3853_v22  ;;  %v3907_v21 = vld [vmem:[#allocation7 + $0x368] ss:$24 sps:$4 sm:$0xff]   ;;  %v3912_v22 = vld [vmem:[#allocation7 + $0x3c] ss:$24 sps:$4 sm:$0xff]  }
  0xac   :  { %1636 = vmatprep.subr.bf16.mxu0 %v3858_v23  ;;  %1677 = vmatprep.subr.bf16.mxu1 %v3861_v24  ;;  %v3915_v23 = vld [vmem:[#allocation7 + $0x33c] ss:$24 sps:$4 sm:$0xff]   ;;  %v3910_v24 = vld [vmem:[#allocation7 + $0x38] ss:$24 sps:$4 sm:$0xff]  }
  0xaf   :  { %1637 = vmatpush2.bf16.msra.mxu0 %v3856_v25  ;;  %1678 = vmatpush2.bf16.msra.mxu1 %v3859_v26  ;;  %v3913_v25 = vld [vmem:[#allocation7 + $0x338] ss:$24 sps:$4 sm:$0xff]   ;;  %v3918_v26 = vld [vmem:[#allocation7 + $0xc] ss:$24 sps:$4 sm:$0xff]  }
  0xb0   :  { %1638 = vmatprep.subr.bf16.mxu0 %v3864_v27  ;;  %1679 = vmatprep.subr.bf16.mxu1 %v3867_v28  ;;  %v3921_v27 = vld [vmem:[#allocation7 + $0x30c] ss:$24 sps:$4 sm:$0xff]   ;;  %v3916_v28 = vld [vmem:[#allocation7 + $0x8] ss:$24 sps:$4 sm:$0xff]  }
  0xb3   :  { %1639 = vmatpush2.bf16.msra.mxu0 %v3862_v29  ;;  %1680 = vmatpush2.bf16.msra.mxu1 %v3865_v30  ;;  %v3919_v29 = vld [vmem:[#allocation7 + $0x308] ss:$24 sps:$4 sm:$0xff]   ;;  %v3924_v30 = vld [vmem:[#allocation7 + $0x2dc] ss:$24 sps:$4 sm:$0xff]  }
  0xb4   :  { %1640 = vmatprep.subr.bf16.mxu0 %v3870_v31  ;;  %1681 = vmatprep.subr.bf16.mxu1 %v3873_v32  ;;  %v3927_v31 = vld [vmem:[#allocation7 + $0x5dc] ss:$24 sps:$4 sm:$0xff]   ;;  %v3922_v32 = vld [vmem:[#allocation7 + $0x2d8] ss:$24 sps:$4 sm:$0xff]  }
  0xb7   :  { %1641 = vmatpush2.bf16.msra.mxu0 %v3868_v33  ;;  %1682 = vmatpush2.bf16.msra.mxu1 %v3871_v34  ;;  %v3925_v33 = vld [vmem:[#allocation7 + $0x5d8] ss:$24 sps:$4 sm:$0xff]   ;;  %v3930_v34 = vld [vmem:[#allocation7 + $0x2ac] ss:$24 sps:$4 sm:$0xff]  }
  0xb8   :  { %1692 = vmatprep.subr.bf16.mxu0 %v3876_v35  ;;  %1733 = vmatprep.subr.bf16.mxu1 %v3879_v36  ;;  %v3933_v35 = vld [vmem:[#allocation7 + $0x5ac] ss:$24 sps:$4 sm:$0xff]   ;;  %v3928_v36 = vld [vmem:[#allocation7 + $0x2a8] ss:$24 sps:$4 sm:$0xff]  }
 0x13a   :  { %v375_v48 = vpop.f32.mrf.mxu0  ;;  %v416_v49 = vpop.f32.mrf.mxu1 }
 0x13b   :  { %v417_v50 = vadd.f32 %v416_v49, %v172_v44  ;;  %v376_v51 = vadd.f32 %v375_v48, %v164_v45  ;;  %v3939_v44 = vld [vmem:[#allocation7 + $0x57c] ss:$24 sps:$4 sm:$0xff]   ;;  %v3934_v45 = vld [vmem:[#allocation7 + $0x278] ss:$24 sps:$4 sm:$0xff]   ;;  %v3945_v48 = vld [vmem:[#allocation7 + $0x54c] ss:$24 sps:$4 sm:$0xff]  }
 0x13c   :  { %v377_v52 = vpop.f32.mrf.mxu0  ;;  %v418_v53 = vpop.f32.mrf.mxu1  ;;  %v3940_v49 = vld [vmem:[#allocation7 + $0x248] ss:$24 sps:$4 sm:$0xff]  }
 0x13d   :  { %v378_v54 = vadd.f32 %v377_v52, %v168_v46  ;;  %v419_v55 = vadd.f32 %v418_v53, %v176_v47  ;;  %v4538_v56 = vpack.c.bf16 %v417_v50, %v417_v50  ;;  %v4544_v63 = vpack.c.bf16 %v376_v51, %v376_v51  ;;  %v3937_v46 = vld [vmem:[#allocation7 + $0x578] ss:$24 sps:$4 sm:$0xff]   ;;  %v3942_v47 = vld [vmem:[#allocation7 + $0x24c] ss:$24 sps:$4 sm:$0xff]   ;;  %v3943_v50 = vld [vmem:[#allocation7 + $0x548] ss:$24 sps:$4 sm:$0xff]  }
 0x13e   :  { %v379_v57 = vpop.f32.mrf.mxu0  ;;  %v420_v58 = vpop.f32.mrf.mxu1  ;;  %v3948_v51 = vld [vmem:[#allocation7 + $0x21c] ss:$24 sps:$4 sm:$0xff]   ;;  %v3946_v53 = vld [vmem:[#allocation7 + $0x218] ss:$24 sps:$4 sm:$0xff]  }
 0x13f   :  { %v4540_v59 = vpack.c.bf16 %v378_v54, %v378_v54  ;;  %v4542_v60 = vpack.c.bf16 %v419_v55, %v419_v55  ;;  %v3951_v52 = vld [vmem:[#allocation7 + $0x51c] ss:$24 sps:$4 sm:$0xff]   ;;  %v3949_v54 = vld [vmem:[#allocation7 + $0x518] ss:$24 sps:$4 sm:$0xff]   ;;  %v3954_v55 = vld [vmem:[#allocation7 + $0x1ec] ss:$24 sps:$4 sm:$0xff]  }
 0x140   :  { %v380_v0 = vpop.f32.mrf.mxu0  ;;  %v421_v1 = vpop.f32.mrf.mxu1  ;;  %v3957_v57 = vld [vmem:[#allocation7 + $0x4ec] ss:$24 sps:$4 sm:$0xff]   ;;  %v3952_v58 = vld [vmem:[#allocation7 + $0x1e8] ss:$24 sps:$4 sm:$0xff]  }
 0x141   :  { %1642 = vmatprep.mubr.bf16.mxu0 %v4540_v59  ;;  %1683 = vmatprep.mubr.bf16.mxu1 %v4542_v60  ;;  %v3963_v0 = vld [vmem:[#allocation7 + $0x4bc] ss:$24 sps:$4 sm:$0xff]   ;;  %v3958_v1 = vld [vmem:[#allocation7 + $0x1b8] ss:$24 sps:$4 sm:$0xff]  }
 0x142   :  { %1643 = vmatmul.mubr.bf16.vlgmr.msra.gmra.mxu0 %v4544_v63  ;;  %1684 = vmatmul.mubr.bf16.vlgmr.msra.gmra.mxu1 %v4538_v56 }
 0x143   :  { %1693 = vmatpush1.bf16.msra.mxu0 %v3874_v61  ;;  %1734 = vmatpush1.bf16.msra.mxu1 %v3877_v62  ;;  %v3955_v61 = vld [vmem:[#allocation7 + $0x4e8] ss:$24 sps:$4 sm:$0xff]   ;;  %v3960_v62 = vld [vmem:[#allocation7 + $0x1bc] ss:$24 sps:$4 sm:$0xff]  }
 0x144   :  { %1724 = vmatprep.mubr.bf16.mxu0 %v4540_v59  ;;  %1765 = vmatprep.mubr.bf16.mxu1 %v4542_v60 }
 0x145   :  { %1694 = vmatprep.subr.bf16.mxu0 %v3882_v2  ;;  %1735 = vmatprep.subr.bf16.mxu1 %v3885_v3  ;;  %v3961_v2 = vld [vmem:[#allocation7 + $0x4b8] ss:$24 sps:$4 sm:$0xff]   ;;  %v3966_v3 = vld [vmem:[#allocation7 + $0x18c] ss:$24 sps:$4 sm:$0xff]  }
 0x147   :  { %1695 = vmatpush1.bf16.msra.mxu0 %v3880_v4  ;;  %1736 = vmatpush1.bf16.msra.mxu1 %v3883_v5  ;;  %v3969_v4 = vld [vmem:[#allocation7 + $0x48c] ss:$24 sps:$4 sm:$0xff]   ;;  %v3964_v5 = vld [vmem:[#allocation7 + $0x188] ss:$24 sps:$4 sm:$0xff]  }
 0x148   :  { %1696 = vmatprep.subr.bf16.mxu0 %v3888_v6  ;;  %1737 = vmatprep.subr.bf16.mxu1 %v3891_v7  ;;  %v3967_v6 = vld [vmem:[#allocation7 + $0x488] ss:$24 sps:$4 sm:$0xff]   ;;  %v3972_v7 = vld [vmem:[#allocation7 + $0x164] ss:$24 sps:$4 sm:$0xff]  }
 0x14b   :  { %1697 = vmatpush1.bf16.msra.mxu0 %v3886_v8  ;;  %1738 = vmatpush1.bf16.msra.mxu1 %v3889_v9  ;;  %v3975_v8 = vld [vmem:[#allocation7 + $0x464] ss:$24 sps:$4 sm:$0xff]   ;;  %v3970_v9 = vld [vmem:[#allocation7 + $0x160] ss:$24 sps:$4 sm:$0xff]  }
 0x14c   :  { %1698 = vmatprep.subr.bf16.mxu0 %v3894_v10  ;;  %1739 = vmatprep.subr.bf16.mxu1 %v3897_v11  ;;  %v3973_v10 = vld [vmem:[#allocation7 + $0x460] ss:$24 sps:$4 sm:$0xff]   ;;  %v3978_v11 = vld [vmem:[#allocation7 + $0x134] ss:$24 sps:$4 sm:$0xff]  }
 0x14f   :  { %1699 = vmatpush1.bf16.msra.mxu0 %v3892_v12  ;;  %1740 = vmatpush1.bf16.msra.mxu1 %v3895_v13  ;;  %v3981_v12 = vld [vmem:[#allocation7 + $0x434] ss:$24 sps:$4 sm:$0xff]   ;;  %v3976_v13 = vld [vmem:[#allocation7 + $0x130] ss:$24 sps:$4 sm:$0xff]  }
 0x150   :  { %1700 = vmatprep.subr.bf16.mxu0 %v3900_v14  ;;  %1741 = vmatprep.subr.bf16.mxu1 %v3903_v15  ;;  %v3979_v14 = vld [vmem:[#allocation7 + $0x430] ss:$24 sps:$4 sm:$0xff]   ;;  %v3984_v15 = vld [vmem:[#allocation7 + $0x104] ss:$24 sps:$4 sm:$0xff]  }
 0x153   :  { %1701 = vmatpush1.bf16.msra.mxu0 %v3898_v16  ;;  %1742 = vmatpush1.bf16.msra.mxu1 %v3901_v17  ;;  %v3987_v16 = vld [vmem:[#allocation7 + $0x404] ss:$24 sps:$4 sm:$0xff]   ;;  %v3982_v17 = vld [vmem:[#allocation7 + $0x100] ss:$24 sps:$4 sm:$0xff]  }
 0x154   :  { %1702 = vmatprep.subr.bf16.mxu0 %v3906_v18  ;;  %1743 = vmatprep.subr.bf16.mxu1 %v3909_v19  ;;  %v3985_v18 = vld [vmem:[#allocation7 + $0x400] ss:$24 sps:$4 sm:$0xff]   ;;  %v3990_v19 = vld [vmem:[#allocation7 + $0xd4] ss:$24 sps:$4 sm:$0xff]  }
 0x157   :  { %1703 = vmatpush1.bf16.msra.mxu0 %v3904_v20  ;;  %1744 = vmatpush1.bf16.msra.mxu1 %v3907_v21  ;;  %v3993_v20 = vld [vmem:[#allocation7 + $0x3d4] ss:$24 sps:$4 sm:$0xff]   ;;  %v3988_v21 = vld [vmem:[#allocation7 + $0xd0] ss:$24 sps:$4 sm:$0xff]  }
 0x158   :  { %1704 = vmatprep.subr.bf16.mxu0 %v3912_v22  ;;  %1745 = vmatprep.subr.bf16.mxu1 %v3915_v23  ;;  %v3996_v22 = vld [vmem:[#allocation7 + $0xa4] ss:$24 sps:$4 sm:$0xff]   ;;  %v3994_v23 = vld [vmem:[#allocation7 + $0xa0] ss:$24 sps:$4 sm:$0xff]  }
 0x15b   :  { %1705 = vmatpush1.bf16.msra.mxu0 %v3910_v24  ;;  %1746 = vmatpush1.bf16.msra.mxu1 %v3913_v25  ;;  %v3997_v24 = vld [vmem:[#allocation7 + $0x3a0] ss:$24 sps:$4 sm:$0xff]   ;;  %v4002_v25 = vld [vmem:[#allocation7 + $0x74] ss:$24 sps:$4 sm:$0xff]  }
 0x15c   :  { %1706 = vmatprep.subr.bf16.mxu0 %v3918_v26  ;;  %1747 = vmatprep.subr.bf16.mxu1 %v3921_v27  ;;  %v4005_v26 = vld [vmem:[#allocation7 + $0x374] ss:$24 sps:$4 sm:$0xff]   ;;  %v4000_v27 = vld [vmem:[#allocation7 + $0x70] ss:$24 sps:$4 sm:$0xff]  }
 0x15f   :  { %1707 = vmatpush1.bf16.msra.mxu0 %v3916_v28  ;;  %1748 = vmatpush1.bf16.msra.mxu1 %v3919_v29  ;;  %v4003_v28 = vld [vmem:[#allocation7 + $0x370] ss:$24 sps:$4 sm:$0xff]   ;;  %v4008_v29 = vld [vmem:[#allocation7 + $0x44] ss:$24 sps:$4 sm:$0xff]  }
 0x160   :  { %1708 = vmatprep.subr.bf16.mxu0 %v3924_v30  ;;  %1749 = vmatprep.subr.bf16.mxu1 %v3927_v31  ;;  %v4011_v30 = vld [vmem:[#allocation7 + $0x344] ss:$24 sps:$4 sm:$0xff]   ;;  %v4006_v31 = vld [vmem:[#allocation7 + $0x40] ss:$24 sps:$4 sm:$0xff]  }
 0x163   :  { %1709 = vmatpush2.bf16.msra.mxu0 %v3922_v32  ;;  %1750 = vmatpush2.bf16.msra.mxu1 %v3925_v33  ;;  %v4009_v32 = vld [vmem:[#allocation7 + $0x340] ss:$24 sps:$4 sm:$0xff]   ;;  %v4014_v33 = vld [vmem:[#allocation7 + $0x14] ss:$24 sps:$4 sm:$0xff]  }
 0x164   :  { %1710 = vmatprep.subr.bf16.mxu0 %v3930_v34  ;;  %1751 = vmatprep.subr.bf16.mxu1 %v3933_v35  ;;  %v4017_v34 = vld [vmem:[#allocation7 + $0x314] ss:$24 sps:$4 sm:$0xff]   ;;  %v4012_v35 = vld [vmem:[#allocation7 + $0x10] ss:$24 sps:$4 sm:$0xff]  }
 0x167   :  { %1711 = vmatpush2.bf16.msra.mxu0 %v3928_v36  ;;  %1752 = vmatpush2.bf16.msra.mxu1 %v3931_v37  ;;  %v4015_v36 = vld [vmem:[#allocation7 + $0x310] ss:$24 sps:$4 sm:$0xff]   ;;  %v4020_v37 = vld [vmem:[#allocation7 + $0x2e4] ss:$24 sps:$4 sm:$0xff]  }
 0x168   :  { %1712 = vmatprep.subr.bf16.mxu0 %v3936_v41  ;;  %1753 = vmatprep.subr.bf16.mxu1 %v3939_v44  ;;  %v4023_v41 = vld [vmem:[#allocation7 + $0x5e4] ss:$24 sps:$4 sm:$0xff]   ;;  %v4018_v44 = vld [vmem:[#allocation7 + $0x2e0] ss:$24 sps:$4 sm:$0xff]  }
 0x16b   :  { %1713 = vmatpush2.bf16.msra.mxu0 %v3934_v45  ;;  %1754 = vmatpush2.bf16.msra.mxu1 %v3937_v46  ;;  %v4021_v45 = vld [vmem:[#allocation7 + $0x5e0] ss:$24 sps:$4 sm:$0xff]   ;;  %v4026_v46 = vld [vmem:[#allocation7 + $0x2b4] ss:$24 sps:$4 sm:$0xff]  }
 0x16c   :  { %1714 = vmatprep.subr.bf16.mxu0 %v3942_v47  ;;  %1755 = vmatprep.subr.bf16.mxu1 %v3945_v48  ;;  %v4029_v47 = vld [vmem:[#allocation7 + $0x5b4] ss:$24 sps:$4 sm:$0xff]   ;;  %v4024_v48 = vld [vmem:[#allocation7 + $0x2b0] ss:$24 sps:$4 sm:$0xff]  }
 0x16f   :  { %1715 = vmatpush2.bf16.msra.mxu0 %v3940_v49  ;;  %1756 = vmatpush2.bf16.msra.mxu1 %v3943_v50  ;;  %v4027_v49 = vld [vmem:[#allocation7 + $0x5b0] ss:$24 sps:$4 sm:$0xff]   ;;  %v4032_v50 = vld [vmem:[#allocation7 + $0x284] ss:$24 sps:$4 sm:$0xff]  }
 0x170   :  { %1716 = vmatprep.subr.bf16.mxu0 %v3948_v51  ;;  %1757 = vmatprep.subr.bf16.mxu1 %v3951_v52  ;;  %v4035_v51 = vld [vmem:[#allocation7 + $0x584] ss:$24 sps:$4 sm:$0xff]   ;;  %v4030_v52 = vld [vmem:[#allocation7 + $0x280] ss:$24 sps:$4 sm:$0xff]  }
 0x173   :  { %1717 = vmatpush2.bf16.msra.mxu0 %v3946_v53  ;;  %1758 = vmatpush2.bf16.msra.mxu1 %v3949_v54  ;;  %v4033_v53 = vld [vmem:[#allocation7 + $0x580] ss:$24 sps:$4 sm:$0xff]   ;;  %v4038_v54 = vld [vmem:[#allocation7 + $0x254] ss:$24 sps:$4 sm:$0xff]  }
 0x174   :  { %1718 = vmatprep.subr.bf16.mxu0 %v3954_v55  ;;  %1759 = vmatprep.subr.bf16.mxu1 %v3957_v57  ;;  %v4041_v55 = vld [vmem:[#allocation7 + $0x554] ss:$24 sps:$4 sm:$0xff]   ;;  %v4036_v57 = vld [vmem:[#allocation7 + $0x250] ss:$24 sps:$4 sm:$0xff]  }
 0x177   :  { %1719 = vmatpush2.bf16.msra.mxu0 %v3952_v58  ;;  %1760 = vmatpush2.bf16.msra.mxu1 %v3955_v61  ;;  %v4039_v58 = vld [vmem:[#allocation7 + $0x550] ss:$24 sps:$4 sm:$0xff]   ;;  %v4044_v61 = vld [vmem:[#allocation7 + $0x224] ss:$24 sps:$4 sm:$0xff]  }
 0x178   :  { %1720 = vmatprep.subr.bf16.mxu0 %v3960_v62  ;;  %1761 = vmatprep.subr.bf16.mxu1 %v3963_v0  ;;  %v4047_v62 = vld [vmem:[#allocation7 + $0x524] ss:$24 sps:$4 sm:$0xff]   ;;  %v4042_v0 = vld [vmem:[#allocation7 + $0x220] ss:$24 sps:$4 sm:$0xff]  }
 0x17b   :  { %1721 = vmatpush2.bf16.msra.mxu0 %v3958_v1  ;;  %1762 = vmatpush2.bf16.msra.mxu1 %v3961_v2  ;;  %v4045_v1 = vld [vmem:[#allocation7 + $0x520] ss:$24 sps:$4 sm:$0xff]   ;;  %v4050_v2 = vld [vmem:[#allocation7 + $0x1f4] ss:$24 sps:$4 sm:$0xff]  }
 0x17c   :  { %1722 = vmatprep.subr.bf16.mxu0 %v3966_v3  ;;  %1763 = vmatprep.subr.bf16.mxu1 %v3969_v4  ;;  %v4053_v3 = vld [vmem:[#allocation7 + $0x4f4] ss:$24 sps:$4 sm:$0xff]   ;;  %v4048_v4 = vld [vmem:[#allocation7 + $0x1f0] ss:$24 sps:$4 sm:$0xff]  }
 0x17f   :  { %1723 = vmatpush2.bf16.msra.mxu0 %v3964_v5  ;;  %1764 = vmatpush2.bf16.msra.mxu1 %v3967_v6  ;;  %v4051_v5 = vld [vmem:[#allocation7 + $0x4f0] ss:$24 sps:$4 sm:$0xff]   ;;  %v4056_v6 = vld [vmem:[#allocation7 + $0x1c4] ss:$24 sps:$4 sm:$0xff]  }
 0x180   :  { %1774 = vmatprep.subr.bf16.mxu0 %v3972_v7  ;;  %1815 = vmatprep.subr.bf16.mxu1 %v3975_v8  ;;  %v4059_v7 = vld [vmem:[#allocation7 + $0x4c4] ss:$24 sps:$4 sm:$0xff]   ;;  %v4054_v8 = vld [vmem:[#allocation7 + $0x1c0] ss:$24 sps:$4 sm:$0xff]  }
 0x182   :  { %1725 = vmatmul.mubr.bf16.vlgmr.msra.gmra.mxu0 %v4544_v63  ;;  %1766 = vmatmul.mubr.bf16.vlgmr.msra.gmra.mxu1 %v4538_v56 }
 0x183   :  { %1775 = vmatpush1.bf16.msra.mxu0 %v3970_v9  ;;  %1806 = vmatprep.mubr.bf16.mxu0 %v4540_v59  ;;  %v3991_v59 = vld [vmem:[#allocation7 + $0x3d0] ss:$24 sps:$4 sm:$0xff]   ;;  %v4057_v9 = vld [vmem:[#allocation7 + $0x4c0] ss:$24 sps:$4 sm:$0xff]  }
 0x184   :  { %1816 = vmatpush1.bf16.msra.mxu1 %v3973_v10  ;;  %1847 = vmatprep.mubr.bf16.mxu1 %v4542_v60  ;;  %v3999_v60 = vld [vmem:[#allocation7 + $0x3a4] ss:$24 sps:$4 sm:$0xff]   ;;  %v4062_v10 = vld [vmem:[#allocation7 + $0x194] ss:$24 sps:$4 sm:$0xff]  }
 0x185   :  { %1776 = vmatprep.subr.bf16.mxu0 %v3978_v11  ;;  %1817 = vmatprep.subr.bf16.mxu1 %v3981_v12  ;;  %v4065_v11 = vld [vmem:[#allocation7 + $0x494] ss:$24 sps:$4 sm:$0xff]   ;;  %v4060_v12 = vld [vmem:[#allocation7 + $0x190] ss:$24 sps:$4 sm:$0xff]  }
 0x187   :  { %1777 = vmatpush1.bf16.msra.mxu0 %v3976_v13  ;;  %v4063_v13 = vld [vmem:[#allocation7 + $0x490] ss:$24 sps:$4 sm:$0xff]  }
 0x188   :  { %1818 = vmatpush1.bf16.msra.mxu1 %v3979_v14  ;;  %1778 = vmatprep.subr.bf16.mxu0 %v3984_v15  ;;  %v4068_v14 = vld [vmem:[#allocation8 + $0x74] ss:$8 sps:$4 sm:$0xff]  }
 0x189   :  { %1819 = vmatprep.subr.bf16.mxu1 %v3987_v16  ;;  %v4116_v15 = vld [vmem:[#allocation8 + $0x174] ss:$8 sps:$4 sm:$0xff]   ;;  %v4066_v16 = vld [vmem:[#allocation8 + $0x70] ss:$8 sps:$4 sm:$0xff]  }
 0x18b   :  { %1779 = vmatpush1.bf16.msra.mxu0 %v3982_v17  ;;  %v4071_v17 = vld [vmem:[#allocation8 + $0x64] ss:$8 sps:$4 sm:$0xff]  }
 0x18c   :  { %1820 = vmatpush1.bf16.msra.mxu1 %v3985_v18  ;;  %1780 = vmatprep.subr.bf16.mxu0 %v3990_v19  ;;  %v4114_v18 = vld [vmem:[#allocation8 + $0x170] ss:$8 sps:$4 sm:$0xff]   ;;  %v4119_v19 = vld [vmem:[#allocation8 + $0x164] ss:$8 sps:$4 sm:$0xff]  }
 0x18d   :  { %1821 = vmatprep.subr.bf16.mxu1 %v3993_v20  ;;  %v4069_v20 = vld [vmem:[#allocation8 + $0x60] ss:$8 sps:$4 sm:$0xff]  }
 0x18f   :  { %1781 = vmatpush1.bf16.msra.mxu0 %v3988_v21  ;;  %v4074_v21 = vld [vmem:[#allocation8 + $0x54] ss:$8 sps:$4 sm:$0xff]  }
 0x190   :  { %1822 = vmatpush1.bf16.msra.mxu1 %v3991_v59  ;;  %1782 = vmatprep.subr.bf16.mxu0 %v3996_v22  ;;  %v4117_v59 = vld [vmem:[#allocation8 + $0x160] ss:$8 sps:$4 sm:$0xff]   ;;  %v4122_v22 = vld [vmem:[#allocation8 + $0x154] ss:$8 sps:$4 sm:$0xff]  }
 0x191   :  { %1823 = vmatprep.subr.bf16.mxu1 %v3999_v60  ;;  %v4072_v60 = vld [vmem:[#allocation8 + $0x50] ss:$8 sps:$4 sm:$0xff]  }
 0x193   :  { %1783 = vmatpush1.bf16.msra.mxu0 %v3994_v23  ;;  %v4077_v23 = vld [vmem:[#allocation8 + $0x44] ss:$8 sps:$4 sm:$0xff]  }
 0x194   :  { %1824 = vmatpush1.bf16.msra.mxu1 %v3997_v24  ;;  %1784 = vmatprep.subr.bf16.mxu0 %v4002_v25  ;;  %v4120_v24 = vld [vmem:[#allocation8 + $0x150] ss:$8 sps:$4 sm:$0xff]   ;;  %v4125_v25 = vld [vmem:[#allocation8 + $0x144] ss:$8 sps:$4 sm:$0xff]  }
 0x195   :  { %1825 = vmatprep.subr.bf16.mxu1 %v4005_v26  ;;  %v4123_v26 = vld [vmem:[#allocation8 + $0x140] ss:$8 sps:$4 sm:$0xff]  }
 0x197   :  { %1785 = vmatpush1.bf16.msra.mxu0 %v4000_v27  ;;  %v4128_v27 = vld [vmem:[#allocation8 + $0x134] ss:$8 sps:$4 sm:$0xff]  }
 0x198   :  { %1826 = vmatpush1.bf16.msra.mxu1 %v4003_v28  ;;  %1786 = vmatprep.subr.bf16.mxu0 %v4008_v29  ;;  %v4078_v28 = vld [vmem:[#allocation8 + $0x30] ss:$8 sps:$4 sm:$0xff]   ;;  %v4083_v29 = vld [vmem:[#allocation8 + $0x24] ss:$8 sps:$4 sm:$0xff]  }
 0x199   :  { %1827 = vmatprep.subr.bf16.mxu1 %v4011_v30  ;;  %v4126_v30 = vld [vmem:[#allocation8 + $0x130] ss:$8 sps:$4 sm:$0xff]  }
 0x19b   :  { %1787 = vmatpush1.bf16.msra.mxu0 %v4006_v31  ;;  %v4131_v31 = vld [vmem:[#allocation8 + $0x124] ss:$8 sps:$4 sm:$0xff]  }
 0x19c   :  { %1828 = vmatpush1.bf16.msra.mxu1 %v4009_v32  ;;  %1788 = vmatprep.subr.bf16.mxu0 %v4014_v33  ;;  %v4081_v32 = vld [vmem:[#allocation8 + $0x20] ss:$8 sps:$4 sm:$0xff]   ;;  %v4086_v33 = vld [vmem:[#allocation8 + $0x14] ss:$8 sps:$4 sm:$0xff]  }
 0x19d   :  { %1829 = vmatprep.subr.bf16.mxu1 %v4017_v34  ;;  %v4129_v34 = vld [vmem:[#allocation8 + $0x120] ss:$8 sps:$4 sm:$0xff]  }
 0x19f   :  { %1789 = vmatpush1.bf16.msra.mxu0 %v4012_v35  ;;  %v4134_v35 = vld [vmem:[#allocation8 + $0x114] ss:$8 sps:$4 sm:$0xff]  }
 0x1a0   :  { %1830 = vmatpush1.bf16.msra.mxu1 %v4015_v36  ;;  %1790 = vmatprep.subr.bf16.mxu0 %v4020_v37  ;;  %v4084_v36 = vld [vmem:[#allocation8 + $0x10] ss:$8 sps:$4 sm:$0xff]   ;;  %v4089_v37 = vld [vmem:[#allocation8 + $0x4] ss:$8 sps:$4 sm:$0xff]  }
 0x1a1   :  { %1831 = vmatprep.subr.bf16.mxu1 %v4023_v41  ;;  %v4132_v41 = vld [vmem:[#allocation8 + $0x110] ss:$8 sps:$4 sm:$0xff]  }
 0x1a3   :  { %1791 = vmatpush2.bf16.msra.mxu0 %v4018_v44  ;;  %v4137_v44 = vld [vmem:[#allocation8 + $0x104] ss:$8 sps:$4 sm:$0xff]  }
 0x1a4   :  { %1832 = vmatpush2.bf16.msra.mxu1 %v4021_v45  ;;  %1792 = vmatprep.subr.bf16.mxu0 %v4026_v46  ;;  %v4087_v45 = vld [vmem:[#allocation8] ss:$8 sps:$4 sm:$0xff]   ;;  %v4092_v46 = vld [vmem:[#allocation8 + $0xf4] ss:$8 sps:$4 sm:$0xff]  }
 0x1a5   :  { %1833 = vmatprep.subr.bf16.mxu1 %v4029_v47  ;;  %v4135_v47 = vld [vmem:[#allocation8 + $0x100] ss:$8 sps:$4 sm:$0xff]  }
 0x1a7   :  { %1793 = vmatpush2.bf16.msra.mxu0 %v4024_v48  ;;  %v4140_v48 = vld [vmem:[#allocation8 + $0x1f4] ss:$8 sps:$4 sm:$0xff]  }
 0x1a8   :  { %1834 = vmatpush2.bf16.msra.mxu1 %v4027_v49  ;;  %1794 = vmatprep.subr.bf16.mxu0 %v4032_v50  ;;  %v4090_v49 = vld [vmem:[#allocation8 + $0xf0] ss:$8 sps:$4 sm:$0xff]   ;;  %v4095_v50 = vld [vmem:[#allocation8 + $0xe4] ss:$8 sps:$4 sm:$0xff]  }
 0x1a9   :  { %1835 = vmatprep.subr.bf16.mxu1 %v4035_v51  ;;  %v4138_v51 = vld [vmem:[#allocation8 + $0x1f0] ss:$8 sps:$4 sm:$0xff]  }
 0x1ab   :  { %1795 = vmatpush2.bf16.msra.mxu0 %v4030_v52  ;;  %v4143_v52 = vld [vmem:[#allocation8 + $0x1e4] ss:$8 sps:$4 sm:$0xff]  }
 0x1ac   :  { %1836 = vmatpush2.bf16.msra.mxu1 %v4033_v53  ;;  %1796 = vmatprep.subr.bf16.mxu0 %v4038_v54  ;;  %v4093_v53 = vld [vmem:[#allocation8 + $0xe0] ss:$8 sps:$4 sm:$0xff]   ;;  %v4098_v54 = vld [vmem:[#allocation8 + $0xd4] ss:$8 sps:$4 sm:$0xff]  }
 0x1ad   :  { %1837 = vmatprep.subr.bf16.mxu1 %v4041_v55  ;;  %v4141_v55 = vld [vmem:[#allocation8 + $0x1e0] ss:$8 sps:$4 sm:$0xff]  }
 0x1af   :  { %1797 = vmatpush2.bf16.msra.mxu0 %v4036_v57  ;;  %v4146_v57 = vld [vmem:[#allocation8 + $0x1d4] ss:$8 sps:$4 sm:$0xff]  }
 0x1b0   :  { %1838 = vmatpush2.bf16.msra.mxu1 %v4039_v58  ;;  %1798 = vmatprep.subr.bf16.mxu0 %v4044_v61  ;;  %v4096_v58 = vld [vmem:[#allocation8 + $0xd0] ss:$8 sps:$4 sm:$0xff]   ;;  %v4101_v61 = vld [vmem:[#allocation8 + $0xc4] ss:$8 sps:$4 sm:$0xff]  }
 0x1b1   :  { %1839 = vmatprep.subr.bf16.mxu1 %v4047_v62  ;;  %v4144_v62 = vld [vmem:[#allocation8 + $0x1d0] ss:$8 sps:$4 sm:$0xff]  }
 0x1b3   :  { %1799 = vmatpush2.bf16.msra.mxu0 %v4042_v0  ;;  %v4149_v0 = vld [vmem:[#allocation8 + $0x1c4] ss:$8 sps:$4 sm:$0xff]  }
 0x1b4   :  { %1840 = vmatpush2.bf16.msra.mxu1 %v4045_v1  ;;  %1800 = vmatprep.subr.bf16.mxu0 %v4050_v2  ;;  %v4099_v1 = vld [vmem:[#allocation8 + $0xc0] ss:$8 sps:$4 sm:$0xff]   ;;  %v4104_v2 = vld [vmem:[#allocation8 + $0xb4] ss:$8 sps:$4 sm:$0xff]  }
 0x1b5   :  { %1841 = vmatprep.subr.bf16.mxu1 %v4053_v3  ;;  %v4147_v3 = vld [vmem:[#allocation8 + $0x1c0] ss:$8 sps:$4 sm:$0xff]  }
 0x1b7   :  { %1801 = vmatpush2.bf16.msra.mxu0 %v4048_v4  ;;  %v4152_v4 = vld [vmem:[#allocation8 + $0x1b4] ss:$8 sps:$4 sm:$0xff]  }
 0x1b8   :  { %1842 = vmatpush2.bf16.msra.mxu1 %v4051_v5  ;;  %1802 = vmatprep.subr.bf16.mxu0 %v4056_v6  ;;  %v4102_v5 = vld [vmem:[#allocation8 + $0xb0] ss:$8 sps:$4 sm:$0xff]   ;;  %v4107_v6 = vld [vmem:[#allocation8 + $0xa4] ss:$8 sps:$4 sm:$0xff]  }
 0x1b9   :  { %1843 = vmatprep.subr.bf16.mxu1 %v4059_v7  ;;  %v4150_v7 = vld [vmem:[#allocation8 + $0x1b0] ss:$8 sps:$4 sm:$0xff]  }
 0x1bb   :  { %1803 = vmatpush2.bf16.msra.mxu0 %v4054_v8  ;;  %v4155_v8 = vld [vmem:[#allocation8 + $0x1a4] ss:$8 sps:$4 sm:$0xff]  }
 0x1bc   :  { %1844 = vmatpush2.bf16.msra.mxu1 %v4057_v9  ;;  %1804 = vmatprep.subr.bf16.mxu0 %v4062_v10  ;;  %v4105_v9 = vld [vmem:[#allocation8 + $0xa0] ss:$8 sps:$4 sm:$0xff]   ;;  %v4110_v10 = vld [vmem:[#allocation8 + $0x94] ss:$8 sps:$4 sm:$0xff]  }
 0x1bd   :  { %1845 = vmatprep.subr.bf16.mxu1 %v4065_v11  ;;  %v4153_v11 = vld [vmem:[#allocation8 + $0x1a0] ss:$8 sps:$4 sm:$0xff]  }
 0x1bf   :  { %1805 = vmatpush2.bf16.msra.mxu0 %v4060_v12  ;;  %v4158_v12 = vld [vmem:[#allocation8 + $0x194] ss:$8 sps:$4 sm:$0xff]  }
 0x1c0   :  { %1846 = vmatpush2.bf16.msra.mxu1 %v4063_v13  ;;  %2063 = vmatprep.subr.bf16.mxu0 %v4068_v14  ;;  %v121_v13 = vld [vmem:[#allocation13 + $0x1] ss:$8 sm:$0xf] }
 0x1c1   :  { %2346 = vmatprep.subr.bf16.mxu1 %v4116_v15  ;;  %v122_v14 = vld [vmem:[#allocation13 + $0x1] ss:$8 sm:$0x30]  ;;  %v4108_v15 = vld [vmem:[#allocation8 + $0x90] ss:$8 sps:$4 sm:$0xff]  }
 0x1c2   :  { %1807 = vmatmul.mubr.bf16.vlgmr.msra.gmra.mxu0 %v4544_v63  ;;  %v4075_v63 = vld [vmem:[#allocation8 + $0x40] ss:$8 sps:$4 sm:$0xff]  }
 0x1c3   :  { %1848 = vmatmul.mubr.bf16.vlgmr.msra.gmra.mxu1 %v4538_v56  ;;  %2064 = vmatpush1.bf16.msra.mxu0 %v4066_v16  ;;  %v4080_v56 = vld [vmem:[#allocation8 + $0x34] ss:$8 sps:$4 sm:$0xff]   ;;  %v4113_v16 = vld [vmem:[#allocation8 + $0x84] ss:$8 sps:$4 sm:$0xff]  }
 0x1c4   :  { %2065 = vmatprep.subr.bf16.mxu0 %v4071_v17  ;;  %2347 = vmatpush1.bf16.msra.mxu1 %v4114_v18  ;;  %v4156_v17 = vld [vmem:[#allocation8 + $0x190] ss:$8 sps:$4 sm:$0xff]   ;;  %v4161_v18 = vld [vmem:[#allocation8 + $0x184] ss:$8 sps:$4 sm:$0xff]  }
 0x1c5   :  { %2348 = vmatprep.subr.bf16.mxu1 %v4119_v19  ;;  %v4558_v19 = vor.u32 %v122_v14, %v121_v13  ;;  %v4185_v13 = vld [vmem:[#allocation10 + $0xa0] sm:$0xff]   ;;  %v4186_v14 = vld [vmem:[#allocation10 + $0xd8] sm:$0xff]  }
 0x1c7   :  { %2066 = vmatpush1.bf16.msra.mxu0 %v4069_v20  ;;  %v4111_v20 = vld [vmem:[#allocation8 + $0x80] ss:$8 sps:$4 sm:$0xff]  }
 0x1c8   :  { %2067 = vmatprep.subr.bf16.mxu0 %v4074_v21  ;;  %2349 = vmatpush1.bf16.msra.mxu1 %v4117_v59  ;;  %v4159_v21 = vld [vmem:[#allocation8 + $0x180] ss:$8 sps:$4 sm:$0xff]   ;;  %v623_v59 = vrot.slane %v4558_v19, %v4526_v40 }
 0x1c9   :  { %2350 = vmatprep.subr.bf16.mxu1 %v4122_v22  ;;  %v627_v22 = vrot.slane %v4558_v19, %v4529_v42 }
 0x1cb   :  { %2068 = vmatpush1.bf16.msra.mxu0 %v4072_v60 }
 0x1cc   :  { %2069 = vmatprep.subr.bf16.mxu0 %v4077_v23  ;;  %2351 = vmatpush1.bf16.msra.mxu1 %v4120_v24 }
 0x1cd   :  { %2352 = vmatprep.subr.bf16.mxu1 %v4125_v25 }
 0x1cf   :  { %2070 = vmatpush1.bf16.msra.mxu0 %v4075_v63 }
 0x1d0   :  { %2071 = vmatprep.subr.bf16.mxu0 %v4080_v56  ;;  %2353 = vmatpush1.bf16.msra.mxu1 %v4123_v26 }
 0x1d1   :  { %2354 = vmatprep.subr.bf16.mxu1 %v4128_v27 }
 0x1d3   :  { %2072 = vmatpush1.bf16.msra.mxu0 %v4078_v28 }
 0x1d4   :  { %2073 = vmatprep.subr.bf16.mxu0 %v4083_v29  ;;  %2355 = vmatpush1.bf16.msra.mxu1 %v4126_v30 }
 0x1d5   :  { %2356 = vmatprep.subr.bf16.mxu1 %v4131_v31 }
 0x1d7   :  { %2074 = vmatpush1.bf16.msra.mxu0 %v4081_v32 }
 0x1d8   :  { %2075 = vmatprep.subr.bf16.mxu0 %v4086_v33  ;;  %2357 = vmatpush1.bf16.msra.mxu1 %v4129_v34  ;;  %v4162_v33 = vld [vmem:[#allocation10 + $0x78] sm:$0xff]  }
 0x1d9   :  { %2358 = vmatprep.subr.bf16.mxu1 %v4134_v35  ;;  %v631_v35 = vrot.slane %v4558_v19, %v171_v39  ;;  %v4164_v39 = vld [vmem:[#allocation10 + $0x70] sm:$0xff]  }
 0x1db   :  { %2076 = vmatpush1.bf16.msra.mxu0 %v4084_v36  ;;  %v635_v36 = vrot.slane %v4558_v19, %v175_v43  ;;  %v4165_v43 = vld [vmem:[#allocation10 + $0x30] sm:$0xff]  }
 0x1dc   :  { %2077 = vmatprep.subr.bf16.mxu0 %v4089_v37  ;;  %2359 = vmatpush1.bf16.msra.mxu1 %v4132_v41 }
 0x1dd   :  { %2360 = vmatprep.subr.bf16.mxu1 %v4137_v44 }
 0x1df   :  { %2078 = vmatpush1.bf16.msra.mxu0 %v4087_v45 }
 0x1e0   :  { %2079 = vmatprep.subr.bf16.mxu0 %v4092_v46  ;;  %2361 = vmatpush1.bf16.msra.mxu1 %v4135_v47 }
 0x1e1   :  { %2362 = vmatprep.subr.bf16.mxu1 %v4140_v48 }
 0x1e3   :  { %2080 = vmatpush2.bf16.msra.mxu0 %v4090_v49 }
 0x1e4   :  { %2081 = vmatprep.subr.bf16.mxu0 %v4095_v50  ;;  %2363 = vmatpush2.bf16.msra.mxu1 %v4138_v51 }
 0x1e5   :  { %2364 = vmatprep.subr.bf16.mxu1 %v4143_v52 }
 0x1e7   :  { %2082 = vmatpush2.bf16.msra.mxu0 %v4093_v53 }
 0x1e8   :  { %2083 = vmatprep.subr.bf16.mxu0 %v4098_v54  ;;  %2365 = vmatpush2.bf16.msra.mxu1 %v4141_v55  ;;  %v4163_v55 = vld [vmem:[#allocation10 + $0x38] sm:$0xff]  }
 0x1e9   :  { %2366 = vmatprep.subr.bf16.mxu1 %v4146_v57 }
 0x1eb   :  { %2084 = vmatpush2.bf16.msra.mxu0 %v4096_v58  ;;  %v4166_v58 = vld [vmem:[#allocation10 + $0x68] sm:$0xff]  }
 0x1ec   :  { %2085 = vmatprep.subr.bf16.mxu0 %v4101_v61  ;;  %2367 = vmatpush2.bf16.msra.mxu1 %v4144_v62  ;;  %v4167_v61 = vld [vmem:[#allocation10 + $0x28] sm:$0xff]   ;;  %v4168_v62 = vld [vmem:[#allocation10 + $0x60] sm:$0xff]  }
 0x1ed   :  { %2368 = vmatprep.subr.bf16.mxu1 %v4149_v0  ;;  %v4178_v0 = vld [vmem:[#allocation10 + $0xf8] sm:$0xff]  }
 0x1ef   :  { %2086 = vmatpush2.bf16.msra.mxu0 %v4099_v1  ;;  %v4179_v1 = vld [vmem:[#allocation10 + $0xb8] sm:$0xff]  }
 0x1f0   :  { %2087 = vmatprep.subr.bf16.mxu0 %v4104_v2  ;;  %2369 = vmatpush2.bf16.msra.mxu1 %v4147_v3  ;;  %v4180_v2 = vld [vmem:[#allocation10 + $0xf0] sm:$0xff]   ;;  %v4169_v3 = vld [vmem:[#allocation10 + $0x20] sm:$0xff]  }
 0x1f1   :  { %2370 = vmatprep.subr.bf16.mxu1 %v4152_v4  ;;  %v4170_v4 = vld [vmem:[#allocation10 + $0x58] sm:$0xff]  }
 0x1f3   :  { %2088 = vmatpush2.bf16.msra.mxu0 %v4102_v5  ;;  %v4181_v5 = vld [vmem:[#allocation10 + $0xb0] sm:$0xff]  }
 0x1f4   :  { %2089 = vmatprep.subr.bf16.mxu0 %v4107_v6  ;;  %2371 = vmatpush2.bf16.msra.mxu1 %v4150_v7  ;;  %v4182_v6 = vld [vmem:[#allocation10 + $0xe8] sm:$0xff]   ;;  %v4171_v7 = vld [vmem:[#allocation10 + $0x18] sm:$0xff]  }
 0x1f5   :  { %2372 = vmatprep.subr.bf16.mxu1 %v4155_v8  ;;  %v4172_v8 = vld [vmem:[#allocation10 + $0x50] sm:$0xff]  }
 0x1f7   :  { %2090 = vmatpush2.bf16.msra.mxu0 %v4105_v9  ;;  %v4183_v9 = vld [vmem:[#allocation10 + $0xa8] sm:$0xff]  }
 0x1f8   :  { %2091 = vmatprep.subr.bf16.mxu0 %v4110_v10  ;;  %2373 = vmatpush2.bf16.msra.mxu1 %v4153_v11  ;;  %v4184_v10 = vld [vmem:[#allocation10 + $0xe0] sm:$0xff]   ;;  %v4173_v11 = vld [vmem:[#allocation10 + $0x10] sm:$0xff]  }
 0x1f9   :  { %2374 = vmatprep.subr.bf16.mxu1 %v4158_v12  ;;  %v4174_v12 = vld [vmem:[#allocation10 + $0x48] sm:$0xff]  }
 0x1fb   :  { %2092 = vmatpush2.bf16.msra.mxu0 %v4108_v15  ;;  %v4175_v15 = vld [vmem:[#allocation10 + $0x8] sm:$0xff]  }
 0x1fc   :  { %2093 = vmatprep.subr.bf16.mxu0 %v4113_v16  ;;  %2375 = vmatpush2.bf16.msra.mxu1 %v4156_v17  ;;  %v4176_v16 = vld [vmem:[#allocation10 + $0x40] sm:$0xff]   ;;  %v4187_v17 = vld [vmem:[#allocation10 + $0x98] sm:$0xff]  }
 0x1fd   :  { %2376 = vmatprep.subr.bf16.mxu1 %v4161_v18  ;;  %v4188_v18 = vld [vmem:[#allocation10 + $0xd0] sm:$0xff]  }
 0x1ff   :  { %2094 = vmatpush2.bf16.msra.mxu0 %v4111_v20  ;;  %v4177_v20 = vld [vmem:[#allocation10] sm:$0xff]  }
 0x200   :  { %2377 = vmatpush2.bf16.msra.mxu1 %v4159_v21  ;;  %3616 = vmatprep.subr.bf16.mxu0 %v4178_v0  ;;  %v4189_v21 = vld [vmem:[#allocation10 + $0x90] sm:$0xff]  }
 0x201   :  { %3638 = vmatprep.subr.bf16.mxu1 %v4162_v33  ;;  %v4194_v0 = vld [vmem:[#allocation8 + $0x270] ss:$8 sps:$4 sm:$0xff]  }
 0x202   :  { %v1644_v60 = vpop.f32.mrf.mxu0  ;;  %v1685_v23 = vpop.f32.mrf.mxu1 }
 0x203   :  { %v1645_v24 = vadd.f32 %v1644_v60, %v623_v59  ;;  %v4190_v59 = vld [vmem:[#allocation10 + $0xc8] sm:$0xff]   ;;  %v642_v60 = vsub.s32 5, %v4522_v38 }
 0x204   :  { %v1646_v25 = vpop.f32.mrf.mxu0  ;;  %v1687_v63 = vpop.f32.mrf.mxu1 }
 0x205   :  { %v1647_v56 = vadd.f32 %v1646_v25, %v627_v22  ;;  %v1686_v26 = vadd.f32 %v1685_v23, %v1645_v24  ;;  %v638_v22 = vsub.s32 4, %v4522_v38  ;;  %v643_v24 = vrot.slane %v4558_v19, %v642_v60  ;;  %v4192_v38 = vld [vmem:[#allocation10 + $0xc0] sm:$0xff]   ;;  %v4224_v60 = vld [vmem:[#allocation8 + $0x2d0] ss:$8 sps:$4 sm:$0xff]  }
 0x206   :  { %v1648_v27 = vpop.f32.mrf.mxu0  ;;  %v1689_v28 = vpop.f32.mrf.mxu1 }
 0x207   :  { %v1688_v29 = vadd.f32 %v1687_v63, %v1647_v56  ;;  %v1856_v34 = vpack.c.bf16 %v1686_v26, %v1686_v26  ;;  %v639_v23 = vrot.slane %v4558_v19, %v638_v22  ;;  %v4196_v19 = vld [vmem:[#allocation8 + $0x274] ss:$8 sps:$4 sm:$0xff]  }
 0x208   :  { %v1649_v30 = vpop.f32.mrf.mxu0  ;;  %v1690_v31 = vpop.f32.mrf.mxu1  ;;  %v4226_v22 = vld [vmem:[#allocation8 + $0x2d4] ss:$8 sps:$4 sm:$0xff]  }
 0x209   :  { %v1857_v32 = vpack.c.bf16 %v1688_v29, %v1688_v29 }
 0x20b   :  { %2095 = vmatprep.mubr.bf16.mxu0 %v1857_v32 }
 0x20c   :  { %2096 = vmatmul.mubr.bf16.vlgmr.msra.gmra.mxu0 %v1856_v34 }
 0x20d   :  { %3617 = vmatpush3.bf16.msra.mxu0 %v4179_v1 }
 0x20e   :  { %3618 = vmatprep.subr.bf16.mxu0 %v4180_v2 }
 0x211   :  { %3619 = vmatpush3.bf16.msra.mxu0 %v4181_v5  ;;  %v4197_v5 = vld [vmem:[#allocation8 + $0x260] ss:$8 sps:$4 sm:$0xff]  }
 0x212   :  { %3620 = vmatprep.subr.bf16.mxu0 %v4182_v6  ;;  %v4202_v6 = vld [vmem:[#allocation8 + $0x254] ss:$8 sps:$4 sm:$0xff]  }
 0x215   :  { %3621 = vmatpush3.bf16.msra.mxu0 %v4183_v9  ;;  %v4203_v9 = vld [vmem:[#allocation8 + $0x240] ss:$8 sps:$4 sm:$0xff]  }
 0x216   :  { %3622 = vmatprep.subr.bf16.mxu0 %v4184_v10  ;;  %v4208_v10 = vld [vmem:[#allocation8 + $0x234] ss:$8 sps:$4 sm:$0xff]  }
 0x219   :  { %3623 = vmatpush3.bf16.msra.mxu0 %v4185_v13  ;;  %v4209_v13 = vld [vmem:[#allocation8 + $0x220] ss:$8 sps:$4 sm:$0xff]  }
 0x21a   :  { %3624 = vmatprep.subr.bf16.mxu0 %v4186_v14  ;;  %v4214_v14 = vld [vmem:[#allocation8 + $0x214] ss:$8 sps:$4 sm:$0xff]  }
 0x21d   :  { %3625 = vmatpush3.bf16.msra.mxu0 %v4187_v17  ;;  %v4215_v17 = vld [vmem:[#allocation8 + $0x200] ss:$8 sps:$4 sm:$0xff]  }
 0x21e   :  { %3626 = vmatprep.subr.bf16.mxu0 %v4188_v18  ;;  %v4220_v18 = vld [vmem:[#allocation8 + $0x2f4] ss:$8 sps:$4 sm:$0xff]  }
 0x221   :  { %3627 = vmatpush3.bf16.msra.mxu0 %v4189_v21  ;;  %v4223_v21 = vld [vmem:[#allocation8 + $0x2e4] ss:$8 sps:$4 sm:$0xff]  }
 0x222   :  { %3628 = vmatprep.subr.bf16.mxu0 %v4190_v59  ;;  %v4221_v59 = vld [vmem:[#allocation8 + $0x2e0] ss:$8 sps:$4 sm:$0xff]  }
 0x242   :  { %v1726_v37 = vpop.f32.mrf.mxu0  ;;  %v1767_v41 = vpop.f32.mrf.mxu1 }
 0x243   :  { %v1727_v44 = vadd.f32 %v1726_v37, %v631_v35  ;;  %v4191_v35 = vld [vmem:[#allocation10 + $0x88] sm:$0xff]  }
 0x244   :  { %v1728_v45 = vpop.f32.mrf.mxu0  ;;  %v1769_v46 = vpop.f32.mrf.mxu1  ;;  %3629 = vmatpush3.bf16.msra.mxu0 %v4191_v35  ;;  %v1859_v37 = vld [vmem:[#allocation13 + $0x2] ss:$8 sm:$0x3]  ;;  %v4244_v35 = vld [vmem:[#allocation10 + $0x170] sm:$0xff]  }
 0x245   :  { %v1729_v47 = vadd.f32 %v1728_v45, %v635_v36  ;;  %v1768_v48 = vadd.f32 %v1767_v41, %v1727_v44  ;;  %v4193_v36 = vld [vmem:[#allocation10 + $0x80] sm:$0xff]   ;;  %3630 = vmatprep.subr.bf16.mxu0 %v4192_v38  ;;  %v1896_v41 = vrot.slane %v1859_v37, %v4526_v40  ;;  %v1900_v44 = vrot.slane %v1859_v37, %v4529_v42  ;;  %v4245_v38 = vld [vmem:[#allocation10 + $0x130] sm:$0xff]  }
 0x246   :  { %v1730_v49 = vpop.f32.mrf.mxu0  ;;  %v1771_v50 = vpop.f32.mrf.mxu1  ;;  %v4248_v37 = vld [vmem:[#allocation10 + $0x160] sm:$0xff]  }
 0x247   :  { %v1770_v51 = vadd.f32 %v1769_v46, %v1729_v47  ;;  %v2138_v57 = vpack.c.bf16 %v1768_v48, %v1768_v48 }
 0x248   :  { %v1731_v52 = vpop.f32.mrf.mxu0  ;;  %v1772_v53 = vpop.f32.mrf.mxu1  ;;  %3631 = vmatpush3.bf16.msra.mxu0 %v4193_v36  ;;  %v4246_v36 = vld [vmem:[#allocation10 + $0x168] sm:$0xff]  }
 0x249   :  { %v2139_v54 = vpack.c.bf16 %v1770_v51, %v1770_v51  ;;  %2902 = vmatprep.subr.bf16.mxu0 %v4196_v19  ;;  %v2141_v53 = vld [vmem:[#allocation13 + $0x3] ss:$8 sm:$0x3] }
 0x24a   :  { %v4247_v19 = vld [vmem:[#allocation10 + $0x128] sm:$0xff]  }
 0x24b   :  { %2378 = vmatprep.mubr.bf16.mxu1 %v2139_v54  ;;  %v2179_v54 = vrot.slane %v2141_v53, %v4526_v40 }
 0x24c   :  { %2379 = vmatmul.mubr.bf16.vlgmr.msra.gmra.mxu1 %v2138_v57 }
 0x24d   :  { %3639 = vmatpush3.bf16.msra.mxu1 %v4163_v55  ;;  %v2183_v55 = vrot.slane %v2141_v53, %v4529_v42  ;;  %v4257_v53 = vld [vmem:[#allocation10 + $0x100] sm:$0xff]  }
 0x24e   :  { %3640 = vmatprep.subr.bf16.mxu1 %v4164_v39 }
 0x251   :  { %3641 = vmatpush3.bf16.msra.mxu1 %v4165_v43 }
 0x252   :  { %3642 = vmatprep.subr.bf16.mxu1 %v4166_v58 }
 0x255   :  { %3643 = vmatpush3.bf16.msra.mxu1 %v4167_v61 }
 0x256   :  { %3644 = vmatprep.subr.bf16.mxu1 %v4168_v62 }
 0x259   :  { %3645 = vmatpush3.bf16.msra.mxu1 %v4169_v3  ;;  %v4199_v3 = vld [vmem:[#allocation8 + $0x264] ss:$8 sps:$4 sm:$0xff]  }
 0x25a   :  { %3646 = vmatprep.subr.bf16.mxu1 %v4170_v4 }
 0x25d   :  { %3647 = vmatpush3.bf16.msra.mxu1 %v4171_v7  ;;  %v4200_v7 = vld [vmem:[#allocation8 + $0x250] ss:$8 sps:$4 sm:$0xff]  }
 0x25e   :  { %3648 = vmatprep.subr.bf16.mxu1 %v4172_v8  ;;  %v4205_v8 = vld [vmem:[#allocation8 + $0x244] ss:$8 sps:$4 sm:$0xff]  }
 0x261   :  { %3649 = vmatpush3.bf16.msra.mxu1 %v4173_v11  ;;  %v4206_v11 = vld [vmem:[#allocation8 + $0x230] ss:$8 sps:$4 sm:$0xff]  }
 0x262   :  { %3650 = vmatprep.subr.bf16.mxu1 %v4174_v12  ;;  %v4211_v12 = vld [vmem:[#allocation8 + $0x224] ss:$8 sps:$4 sm:$0xff]  }
 0x265   :  { %3651 = vmatpush3.bf16.msra.mxu1 %v4175_v15  ;;  %v4212_v15 = vld [vmem:[#allocation8 + $0x210] ss:$8 sps:$4 sm:$0xff]  }
 0x266   :  { %3652 = vmatprep.subr.bf16.mxu1 %v4176_v16  ;;  %v4217_v16 = vld [vmem:[#allocation8 + $0x204] ss:$8 sps:$4 sm:$0xff]  }
 0x269   :  { %3653 = vmatpush3.bf16.msra.mxu1 %v4177_v20  ;;  %v4218_v20 = vld [vmem:[#allocation8 + $0x2f0] ss:$8 sps:$4 sm:$0xff]  }
 0x282   :  { %v1808_v25 = vpop.f32.mrf.mxu0 }
 0x283   :  { %v1809_v63 = vadd.f32 %v1808_v25, %v639_v23  ;;  %v1849_v56 = vpop.f32.mrf.mxu1  ;;  %v4229_v23 = vld [vmem:[#allocation8 + $0x2c4] ss:$8 sps:$4 sm:$0xff]   ;;  %v4232_v25 = vld [vmem:[#allocation8 + $0x2b4] ss:$8 sps:$4 sm:$0xff]  }
 0x284   :  { %v1810_v26 = vpop.f32.mrf.mxu0 }
 0x285   :  { %v4574_v27 = vadd.f32 %v1849_v56, %v1809_v63  ;;  %v1811_v28 = vadd.f32 %v1810_v26, %v643_v24  ;;  %v1851_v29 = vpop.f32.mrf.mxu1  ;;  %v4227_v24 = vld [vmem:[#allocation8 + $0x2c0] ss:$8 sps:$4 sm:$0xff]   ;;  %v4230_v63 = vld [vmem:[#allocation8 + $0x2b0] ss:$8 sps:$4 sm:$0xff]   ;;  %v4235_v56 = vld [vmem:[#allocation8 + $0x2a4] ss:$8 sps:$4 sm:$0xff]  }
 0x286   :  { %v1812_v30 = vpop.f32.mrf.mxu0  ;;  %v4233_v26 = vld [vmem:[#allocation8 + $0x2a0] ss:$8 sps:$4 sm:$0xff]  }
 0x287   :  { %v1852_v31 = vadd.f32 %v1851_v29, %v1811_v28  ;;  %v1853_v32 = vpop.f32.mrf.mxu1  ;;  %v4238_v28 = vld [vmem:[#allocation8 + $0x294] ss:$8 sps:$4 sm:$0xff]   ;;  %v4236_v29 = vld [vmem:[#allocation8 + $0x290] ss:$8 sps:$4 sm:$0xff]   ;;  %v4241_v30 = vld [vmem:[#allocation8 + $0x284] ss:$8 sps:$4 sm:$0xff]  }
 0x288   :  { %v1813_v33 = vpop.f32.mrf.mxu0  ;;  %v2694_v32 = vpack.c.bf16 %v4574_v27, %v4574_v27  ;;  %v4252_v27 = vld [vmem:[#allocation10 + $0x150] sm:$0xff]  }
 0x289   :  { %v1854_v34 = vpop.f32.mrf.mxu1  ;;  %v2695_v4 = vpack.c.bf16 %v1852_v31, %v1852_v31  ;;  %v4239_v31 = vld [vmem:[#allocation8 + $0x280] ss:$8 sps:$4 sm:$0xff]   ;;  %v4242_v33 = vld [vmem:[#allocation10 + $0x178] sm:$0xff]  }
 0x28a   :  { %v4243_v34 = vld [vmem:[#allocation10 + $0x138] sm:$0xff]   ;;  %3660 = vmatprep.subr.bf16.mxu1 %v4242_v33 }
 0x2cc   :  { %v2097_v45 = vpop.f32.mrf.mxu0 }
 0x2cd   :  { %v2098_v46 = vadd.f32 %v2097_v45, %v1896_v41  ;;  %v4249_v41 = vld [vmem:[#allocation10 + $0x120] sm:$0xff]   ;;  %v4251_v45 = vld [vmem:[#allocation10 + $0x118] sm:$0xff]  }
 0x2ce   :  { %v2099_v47 = vpop.f32.mrf.mxu0 }
 0x2cf   :  { %v2100_v48 = vadd.f32 %v2099_v47, %v1900_v44  ;;  %v2104_v51 = vpack.c.bf16 %v2098_v46, %v2098_v46  ;;  %v4250_v44 = vld [vmem:[#allocation10 + $0x158] sm:$0xff]   ;;  %v4253_v46 = vld [vmem:[#allocation10 + $0x110] sm:$0xff]   ;;  %v4254_v47 = vld [vmem:[#allocation10 + $0x148] sm:$0xff]  }
 0x2d0   :  { %v2101_v49 = vpop.f32.mrf.mxu0 }
 0x2d1   :  { %v2105_v50 = vpack.c.bf16 %v2100_v48, %v2100_v48  ;;  %v4255_v48 = vld [vmem:[#allocation10 + $0x108] sm:$0xff]  }
 0x2d2   :  { %v2102_v52 = vpop.f32.mrf.mxu0 }
 0x2d3   :  { %2686 = vmatprep.mubr.bf16.mxu1 %v2105_v50 }
 0x2d4   :  { %2687 = vmatmul.mubr.bf16.vlgmr.msra.gmra.mxu1 %v2104_v51  ;;  %v4256_v51 = vld [vmem:[#allocation10 + $0x140] sm:$0xff]  }
 0x2d5   :  { %3661 = vmatpush3.bf16.msra.mxu1 %v4243_v34 }
 0x2d6   :  { %3662 = vmatprep.subr.bf16.mxu1 %v4244_v35 }
 0x2d9   :  { %3663 = vmatpush3.bf16.msra.mxu1 %v4245_v38 }
 0x2da   :  { %3664 = vmatprep.subr.bf16.mxu1 %v4246_v36 }
 0x2dd   :  { %3665 = vmatpush3.bf16.msra.mxu1 %v4247_v19 }
 0x2de   :  { %3666 = vmatprep.subr.bf16.mxu1 %v4248_v37 }
 0x2e1   :  { %3667 = vmatpush3.bf16.msra.mxu1 %v4249_v41 }
 0x2e2   :  { %3668 = vmatprep.subr.bf16.mxu1 %v4250_v44 }
 0x2e5   :  { %3669 = vmatpush3.bf16.msra.mxu1 %v4251_v45 }
 0x2e6   :  { %3670 = vmatprep.subr.bf16.mxu1 %v4252_v27 }
 0x2e9   :  { %3671 = vmatpush3.bf16.msra.mxu1 %v4253_v46 }
 0x2ea   :  { %3672 = vmatprep.subr.bf16.mxu1 %v4254_v47 }
 0x2ed   :  { %3673 = vmatpush3.bf16.msra.mxu1 %v4255_v48 }
 0x2ee   :  { %3674 = vmatprep.subr.bf16.mxu1 %v4256_v51 }
 0x2f1   :  { %3675 = vmatpush3.bf16.msra.mxu1 %v4257_v53 }
 0x30c   :  { %v2380_v57 = vpop.f32.mrf.mxu1 }
 0x30d   :  { %v2381_v39 = vadd.f32 %v2380_v57, %v2179_v54  ;;  %v4452_v57 = vmov 0.0  }
 0x30e   :  { %v2382_v43 = vpop.f32.mrf.mxu1  ;;  %3691 = vmatprep.subr.bf16.mxu1 %v4452_v57 }
 0x30f   :  { %v2383_v58 = vadd.f32 %v2382_v43, %v2183_v55  ;;  %v2387_v1 = vpack.c.bf16 %v2381_v39, %v2381_v39 }
 0x310   :  { %v2384_v61 = vpop.f32.mrf.mxu1 }
 0x311   :  { %v2388_v62 = vpack.c.bf16 %v2383_v58, %v2383_v58 }
 0x312   :  { %v2385_v2 = vpop.f32.mrf.mxu1 }
 0x313   :  { %2550 = vmatprep.mubr.bf16.mxu0 %v2388_v62 }
 0x314   :  { %2551 = vmatmul.mubr.bf16.vlgmr.msra.gmra.mxu0 %v2387_v1  ;;  %v2697_v1 = vld [vmem:[#allocation13 + $0x4] ss:$8 sm:$0x3] }
 0x315   :  { %2903 = vmatpush1.bf16.msra.mxu0 %v4194_v0  ;;  %2934 = vmatprep.mubr.bf16.mxu0 %v2695_v4  ;;  %v2735_v2 = vrot.slane %v2697_v1, %v4526_v40  ;;  %v4261_v40 = vld [vmem:[#allocation11 + $0x20] sm:$0xff]  }
 0x316   :  { %2904 = vmatprep.subr.bf16.mxu0 %v4199_v3  ;;  %v2739_v3 = vrot.slane %v2697_v1, %v4529_v42  ;;  %v4262_v42 = vld [vmem:[#allocation11 + $0x18] sm:$0xff]  }
 0x319   :  { %2905 = vmatpush1.bf16.msra.mxu0 %v4197_v5 }
 0x31a   :  { %2906 = vmatprep.subr.bf16.mxu0 %v4202_v6 }
 0x31d   :  { %2907 = vmatpush1.bf16.msra.mxu0 %v4200_v7 }
 0x31e   :  { %2908 = vmatprep.subr.bf16.mxu0 %v4205_v8 }
 0x321   :  { %2909 = vmatpush1.bf16.msra.mxu0 %v4203_v9 }
 0x322   :  { %2910 = vmatprep.subr.bf16.mxu0 %v4208_v10  ;;  %v4258_v10 = vld [vmem:[#allocation11 + $0x38] sm:$0xff]  }
 0x325   :  { %2911 = vmatpush1.bf16.msra.mxu0 %v4206_v11 }
 0x326   :  { %2912 = vmatprep.subr.bf16.mxu0 %v4211_v12 }
 0x329   :  { %2913 = vmatpush1.bf16.msra.mxu0 %v4209_v13  ;;  %v4259_v13 = vld [vmem:[#allocation11 + $0x30] sm:$0xff]  }
 0x32a   :  { %2914 = vmatprep.subr.bf16.mxu0 %v4214_v14  ;;  %v4260_v14 = vld [vmem:[#allocation11 + $0x28] sm:$0xff]  }
 0x32d   :  { %2915 = vmatpush1.bf16.msra.mxu0 %v4212_v15  ;;  %v4263_v15 = vld [vmem:[#allocation11 + $0x10] sm:$0xff]  }
 0x32e   :  { %2916 = vmatprep.subr.bf16.mxu0 %v4217_v16  ;;  %v4264_v16 = vld [vmem:[#allocation11 + $0x8] sm:$0xff]  }
 0x331   :  { %2917 = vmatpush1.bf16.msra.mxu0 %v4215_v17  ;;  %v4265_v17 = vld [vmem:[#allocation11] sm:$0xff]  }
 0x332   :  { %2918 = vmatprep.subr.bf16.mxu0 %v4220_v18 }
 0x335   :  { %2919 = vmatpush2.bf16.msra.mxu0 %v4218_v20 }
 0x336   :  { %2920 = vmatprep.subr.bf16.mxu0 %v4223_v21 }
 0x339   :  { %2921 = vmatpush2.bf16.msra.mxu0 %v4221_v59  ;;  %v124_v59 = vld [vmem:[#allocation13 + $0x5] ss:$0 sm:$0xff] }
 0x33a   :  { %2922 = vmatprep.subr.bf16.mxu0 %v4226_v22 }
 0x33d   :  { %2923 = vmatpush2.bf16.msra.mxu0 %v4224_v60 }
 0x33e   :  { %2924 = vmatprep.subr.bf16.mxu0 %v4229_v23 }
 0x341   :  { %2925 = vmatpush2.bf16.msra.mxu0 %v4227_v24 }
 0x342   :  { %2926 = vmatprep.subr.bf16.mxu0 %v4232_v25 }
 0x345   :  { %2927 = vmatpush2.bf16.msra.mxu0 %v4230_v63  ;;  %v125_v63 = vld [vmem:[#allocation13 + $0x6] ss:$0 sm:$0xff] }
 0x346   :  { %2928 = vmatprep.subr.bf16.mxu0 %v4235_v56 }
 0x349   :  { %2929 = vmatpush2.bf16.msra.mxu0 %v4233_v26 }
 0x34a   :  { %2930 = vmatprep.subr.bf16.mxu0 %v4238_v28 }
 0x34d   :  { %2931 = vmatpush2.bf16.msra.mxu0 %v4236_v29 }
 0x34e   :  { %2932 = vmatprep.subr.bf16.mxu0 %v4241_v30 }
 0x351   :  { %2933 = vmatpush2.bf16.msra.mxu0 %v4239_v31 }
 0x354   :  { %2935 = vmatmul.mubr.bf16.vlgmr.msra.gmra.mxu0 %v2694_v32 }
 0x394   :  { %v3654_v49 = vpop.f32.mrf.mxu1 }
 0x396   :  { %v3655_v50 = vpop.f32.mrf.mxu1 }
 0x397   :  { %v3656_v52 = vadd.f32 %v3655_v50, %v3654_v49 }
 0x398   :  { %v3657_v54 = vpop.f32.mrf.mxu1 }
 0x39a   :  { %v3658_v55 = vpop.f32.mrf.mxu1 }
 0x3d4   :  { %v3632_v39 = vpop.f32.mrf.mxu0 }
 0x3d6   :  { %v3633_v43 = vpop.f32.mrf.mxu0 }
 0x3d7   :  { %v3634_v58 = vadd.f32 %v3633_v43, %v3632_v39 }
 0x3d8   :  { %v3635_v61 = vpop.f32.mrf.mxu0 }
 0x3d9   :  { %v2689_v62 = vadd.f32 %v3656_v52, %v3634_v58 }
 0x3da   :  { %v3636_v0 = vpop.f32.mrf.mxu0 }
 0x414   :  { %v2936_v4 = vpop.f32.mrf.mxu0 }
 0x415   :  { %v2937_v5 = vadd.f32 %v2936_v4, %v2735_v2 }
 0x416   :  { %v2938_v6 = vpop.f32.mrf.mxu0 }
 0x417   :  { %v2939_v7 = vadd.f32 %v2938_v6, %v2739_v3  ;;  %v2943_v11 = vpack.c.bf16 %v2937_v5, %v2937_v5 }
 0x418   :  { %v2940_v8 = vpop.f32.mrf.mxu0 }
 0x419   :  { %v2944_v9 = vpack.c.bf16 %v2939_v7, %v2939_v7 }
 0x41a   :  { %v2941_v12 = vpop.f32.mrf.mxu0 }
 0x41b   :  { %3106 = vmatprep.mubr.bf16.mxu1 %v2944_v9 }
 0x41c   :  { %3107 = vmatmul.mubr.bf16.vlgmr.msra.gmra.mxu1 %v2943_v11 }
 0x41d   :  { %3692 = vmatpush3.bf16.msra.mxu1 %v4258_v10  ;;  %3707 = vmatprep.mubr.msk.bf16.mxu1 %vm4453_vm0, %v4452_v57 }
 0x41e   :  { %3693 = vmatprep.subr.bf16.mxu1 %v4452_v57 }
 0x421   :  { %3694 = vmatpush3.bf16.msra.mxu1 %v4259_v13 }
 0x422   :  { %3695 = vmatprep.subr.bf16.mxu1 %v4452_v57 }
 0x425   :  { %3696 = vmatpush3.bf16.msra.mxu1 %v4260_v14 }
 0x426   :  { %3697 = vmatprep.subr.bf16.mxu1 %v4452_v57 }
 0x429   :  { %3698 = vmatpush3.bf16.msra.mxu1 %v4261_v40 }
 0x42a   :  { %3699 = vmatprep.subr.bf16.mxu1 %v4452_v57 }
 0x42d   :  { %3700 = vmatpush3.bf16.msra.mxu1 %v4262_v42 }
 0x42e   :  { %3701 = vmatprep.subr.bf16.mxu1 %v4452_v57 }
 0x431   :  { %3702 = vmatpush3.bf16.msra.mxu1 %v4263_v15 }
 0x432   :  { %3703 = vmatprep.subr.bf16.mxu1 %v4452_v57 }
 0x435   :  { %3704 = vmatpush3.bf16.msra.mxu1 %v4264_v16 }
 0x436   :  { %3705 = vmatprep.subr.bf16.mxu1 %v4452_v57 }
 0x439   :  { %3706 = vmatpush3.bf16.msra.mxu1 %v4265_v17 }
 0x4dc   :  { %v3676_v18 = vpop.f32.mrf.mxu1 }
 0x4de   :  { %v3677_v20 = vpop.f32.mrf.mxu1 }
 0x4df   :  { %v3678_v21 = vadd.f32 %v3677_v20, %v3676_v18 }
 0x4e0   :  { %v3679_v22 = vpop.f32.mrf.mxu1 }
 0x4e1   :  { %v3114_v60 = vadd.f32 %v3678_v21, %v2689_v62 }
 0x4e2   :  { %v3680_v23 = vpop.f32.mrf.mxu1 }
 0x4e3   :  { %v3115_v24 = vadd.f32 %v3114_v60, %v124_v59 }
 0x4e5   :  { %v3116_v25 = vpack.c.bf16 %v3115_v24, %v3115_v24 }
 0x4e7   :  { %3708 = vmatmul.mubr.bf16.vlgmr.msra.gmra.mxu1 %v3116_v25 }
 0x5a7   :  { %v3215_v56 = vpop.f32.mrf.mxu1 }
 0x5a8   :  { %v3216_v26 = vadd.f32 %v3215_v56, %v125_v63 }
 0x5a9   :  { %v3709_v28 = vpop.f32.mrf.mxu1 }
 0x5aa   :  { %3221 = vst [vmem:[#allocation14] sm:$0xff] %v3216_v26 }
 0x5ab   :  { %v3218_v29 = vpop.f32.mrf.mxu1 }
 0x5ac   :  { %4417 = shalt.err (!%p4414_p11)
}
 0x5ad   :  { %3231 = dma.vmem_to_hbm [thread:$0]  %s3229_s6, 128, %s4594_s7, [#allocation4]   ;;  %v3710_v30 = vpop.f32.mrf.mxu1 }
 0x5ae   :  { %4434 = dma.done.wait [#allocation4], 128  }
 0x5af   :  { %4435 = vsyncadd [#allocation4], 4294967168 }
 0x5b0   :  { %3235 = vsyncpa [#allocation3], 1 }
 0x5b1   :  { %3236 = vsyncpa [#allocation6], 1 }
 0x5b2   :  { %3237 = vsyncpa [#allocation9], 1 }
 0x5b3   :  { %3238 = vsyncpa [#allocation12], 1 }
 0x5b4   :  { %3239 = vsyncpa [#allocation4], 1 }

</bundles_post_ra>
